<compile_context>
chip_gen: v7x
topology: tpu7x:2x2x1
jax: 0.10.0
libtpu: 0.0.40
codegen_flags: <defaults>
</compile_context>

<pallas_src>
import functools

import jax
import jax.numpy as jnp
from jax.experimental import pallas as pl
from jax.experimental.pallas import tpu as pltpu

DROPOUT_P = 0.2
N_EMBD = 384            # matches the PyTorch module's n_embd
HIDDEN = 4 * N_EMBD


def _round_up(a, b):
    return (a + b - 1) // b * b


def _splitmix32(x):
    """Stateless 32-bit mixer (uint32 VPU ops only; works on TPU and interpret)."""
    x = x ^ (x >> 16)
    x = x * jnp.uint32(0x7FEB352D)
    x = x ^ (x >> 15)
    x = x * jnp.uint32(0x846CA68B)
    x = x ^ (x >> 16)
    return x


def _ffn_kernel(seed_ref, x_ref, w1_ref, b1_ref, w2_ref, b2_ref, o_ref, *, training):
    # x_ref: (tm, C) f32 | w1_ref: (C, 4C) bf16 | b1_ref: (1, 4C) f32
    # w2_ref: (4C, C) bf16 | b2_ref: (1, C) f32 | o_ref: (tm, C) f32
    x = x_ref[...].astype(jnp.bfloat16)

    # Linear 1 (bf16 MXU, f32 accumulate) + bias + ReLU in f32.
    h = jnp.dot(x, w1_ref[...], preferred_element_type=jnp.float32) + b1_ref[...]
    h = jnp.maximum(h, 0.0)

    if training:
        # Dropout mask: depends only on (seed, global element index) -> fully
        # deterministic and order-independent, so "parallel" grid semantics are
        # safe.  Computed before the second matmul so the VPU work overlaps MXU.
        tm, c = o_ref.shape
        rows = jax.lax.broadcasted_iota(jnp.int32, (tm, c), 0)
        cols = jax.lax.broadcasted_iota(jnp.int32, (tm, c), 1)
        gidx = ((pl.program_id(0) * tm + rows) * c + cols).astype(jnp.uint32)
        seed_u = seed_ref[0].astype(jnp.uint32) * jnp.uint32(0x9E3779B9)
        bits = _splitmix32(gidx + seed_u)
        # keep with prob 1-p  (integer threshold compare, no float convert)
        keep = bits >= jnp.uint32(int(DROPOUT_P * (1 << 32)))

    # Linear 2 (bf16 MXU, f32 accumulate) + bias.
    y = jnp.dot(h.astype(jnp.bfloat16), w2_ref[...],
                preferred_element_type=jnp.float32) + b2_ref[...]

    if training:
        y = jnp.where(keep, y * (1.0 / (1.0 - DROPOUT_P)), 0.0)
    # eval mode: nn.Dropout is the identity.

    o_ref[...] = y.astype(o_ref.dtype)


def feed_forward(x, w1, b1, w2, b2, seed=0, *, training=False, tm=256):
    """x: (B, T, C) float32. w1: (C, 4C), w2: (4C, C) stored (in, out). Returns (B, T, C)."""
    B, T, C = x.shape
    H = w1.shape[1]
    assert C % 128 == 0 and H % 128 == 0, "lane dims must be multiples of 128"
    M = B * T

    # Row tile: want >=256 for full MXU passes, but clamp (8-aligned) to the
    # problem size so small inputs don't pay large padding.  Pad M to a tile
    # multiple and slice the padding away afterwards (no huge-batch requirement).
    tm = max(8, min(_round_up(tm, 8), _round_up(M, 8)))
    m_pad = _round_up(M, tm)

    x2 = x.reshape(M, C).astype(jnp.float32)
    if m_pad != M:
        x2 = jnp.pad(x2, ((0, m_pad - M), (0, 0)))

    w1b = w1.astype(jnp.bfloat16)
    w2b = w2.astype(jnp.bfloat16)
    b1_2 = b1.astype(jnp.float32).reshape(1, H)
    b2_2 = b2.astype(jnp.float32).reshape(1, C)
    seed_arr = jnp.array([seed], dtype=jnp.int32)

    kernel = functools.partial(_ffn_kernel, training=training)

    out2 = pl.pallas_call(
        kernel,
        out_shape=jax.ShapeDtypeStruct((m_pad, C), jnp.float32),
        grid=(m_pad // tm,),
        in_specs=[
            pl.BlockSpec(memory_space=pltpu.SMEM),            # seed scalar
            pl.BlockSpec((tm, C), lambda i: (i, 0)),          # x row-tile
            pl.BlockSpec((C, H), lambda i: (0, 0)),           # w1 (resident, bf16)
            pl.BlockSpec((1, H), lambda i: (0, 0)),           # b1
            pl.BlockSpec((H, C), lambda i: (0, 0)),           # w2 (resident, bf16)
            pl.BlockSpec((1, C), lambda i: (0, 0)),           # b2
        ],
        out_specs=pl.BlockSpec((tm, C), lambda i: (i, 0)),
        compiler_params=pltpu.CompilerParams(
            # mask is order-independent -> safe to shard rows across TCs (v7x)
            dimension_semantics=("parallel",),
            # explicit budget: fits tm up to ~1024 double-buffered, < 64 MiB (v7x)
            vmem_limit_bytes=48 * 1024 * 1024,
        ),
    )(seed_arr, x2, w1b, b1_2, w2b, b2_2)

    if m_pad != M:
        out2 = out2[:M]
    return out2.reshape(B, T, C).astype(x.dtype)


def init_params(key, n_embd):
    """Deterministic init matching nn.Linear's U(-1/sqrt(fan_in), 1/sqrt(fan_in))."""
    hidden = 4 * n_embd
    k1, k2, k3, k4 = jax.random.split(key, 4)
    lim1 = 1.0 / jnp.sqrt(n_embd)
    lim2 = 1.0 / jnp.sqrt(hidden)
    # stored as (in, out): kernel does x @ W
    w1 = jax.random.uniform(k1, (n_embd, hidden), jnp.float32, -lim1, lim1)
    b1 = jax.random.uniform(k2, (hidden,), jnp.float32, -lim1, lim1)
    w2 = jax.random.uniform(k3, (hidden, n_embd), jnp.float32, -lim2, lim2)
    b2 = jax.random.uniform(k4, (n_embd,), jnp.float32, -lim2, lim2)
    return w1, b1, w2, b2


def feed_forward_ref(x, w1, b1, w2, b2):
    """Pure-JAX eval-mode reference mirroring the kernel's bf16-matmul / f32-accumulate numerics."""
    xb = x.astype(jnp.bfloat16)
    h = jnp.dot(xb, w1.astype(jnp.bfloat16), preferred_element_type=jnp.float32) + b1
    h = jnp.maximum(h, 0.0)
    y = jnp.dot(h.astype(jnp.bfloat16), w2.astype(jnp.bfloat16),
                preferred_element_type=jnp.float32) + b2
    return y


if __name__ == "__main__":
    key = jax.random.PRNGKey(0)
    kx, kp = jax.random.split(key)

    B, T, C = 2, 8, N_EMBD
    x = jax.random.normal(kx, (B, T, C), jnp.float32)
    w1, b1, w2, b2 = init_params(kp, C)

    # eval-mode path (dropout == identity) — check against reference
    # (bf16 matmuls -> slightly looser tolerance than pure f32)
    y = jax.block_until_ready(feed_forward(x, w1, b1, w2, b2, training=False))
    y_ref = feed_forward_ref(x, w1, b1, w2, b2)
    assert y.shape == (B, T, C)
    assert jnp.allclose(y, y_ref, atol=1e-2, rtol=1e-2), "mismatch vs reference"

    # training-mode path (fused in-kernel dropout via stateless hash PRNG)
    y_train = jax.block_until_ready(
        feed_forward(x, w1, b1, w2, b2, seed=1234, training=True)
    )
    assert y_train.shape == (B, T, C)
    assert bool(jnp.all(jnp.isfinite(y_train)))

    print("KERNEL_OK")
</pallas_src>

<mosaic_0001>
module attributes {stable_mosaic.version = 11 : i64} {
  func.func @_ffn_kernel(%arg0: i32, %arg1: memref<1xi32, #tpu.memory_space<smem>>, %arg2: memref<16x384xf32, #tpu.memory_space<vmem>>, %arg3: memref<384x1536xbf16, #tpu.memory_space<vmem>>, %arg4: memref<1x1536xf32, #tpu.memory_space<vmem>>, %arg5: memref<1536x384xbf16, #tpu.memory_space<vmem>>, %arg6: memref<1x384xf32, #tpu.memory_space<vmem>>, %arg7: memref<16x384xf32, #tpu.memory_space<vmem>>) attributes {dimension_semantics = [#tpu.dimension_semantics<parallel>], iteration_bounds = array<i64: 1>, scalar_prefetch = 0 : i64, scratch_operands = 0 : i64, tpu.core_type = #tpu.core_type<tc>, window_params = [{transform_indices = @transform_0, window_bounds = array<i64: 1>}, {transform_indices = @transform_1, window_bounds = array<i64: 16, 384>}, {pipeline_mode = #tpu.pipeline_mode<synchronous>, transform_indices = @transform_2, window_bounds = array<i64: 384, 1536>}, {pipeline_mode = #tpu.pipeline_mode<synchronous>, transform_indices = @transform_3, window_bounds = array<i64: 1, 1536>}, {pipeline_mode = #tpu.pipeline_mode<synchronous>, transform_indices = @transform_4, window_bounds = array<i64: 1536, 384>}, {pipeline_mode = #tpu.pipeline_mode<synchronous>, transform_indices = @transform_5, window_bounds = array<i64: 1, 384>}, {transform_indices = @transform_6, window_bounds = array<i64: 16, 384>}]} {
    %c0 = arith.constant 0 : index
    %c0_0 = arith.constant 0 : index
    %0 = vector.load %arg2[%c0, %c0_0] : memref<16x384xf32, #tpu.memory_space<vmem>>, vector<16x384xf32>
    %1 = arith.truncf %0 : vector<16x384xf32> to vector<16x384xbf16>
    %c0_1 = arith.constant 0 : index
    %c0_2 = arith.constant 0 : index
    %2 = vector.load %arg3[%c0_1, %c0_2] : memref<384x1536xbf16, #tpu.memory_space<vmem>>, vector<384x1536xbf16>
    %cst = arith.constant dense<0.000000e+00> : vector<16x1536xf32>
    %3 = tpu.matmul %1, %2, %cst {dimension_numbers = #tpu.dot_dimension_numbers<[1], [0], [0], [1], [0, 0, 1, 1], [], []>} : vector<16x384xbf16>, vector<384x1536xbf16>, vector<16x1536xf32> -> vector<16x1536xf32>
    %c0_3 = arith.constant 0 : index
    %c0_4 = arith.constant 0 : index
    %4 = vector.load %arg4[%c0_3, %c0_4] : memref<1x1536xf32, #tpu.memory_space<vmem>>, vector<1x1536xf32>
    %5 = vector.broadcast %4 : vector<1x1536xf32> to vector<16x1536xf32>
    %6 = arith.addf %3, %5 : vector<16x1536xf32>
    %cst_5 = arith.constant 0.000000e+00 : f32
    %7 = vector.broadcast %cst_5 : f32 to vector<16x1536xf32>
    %8 = arith.maximumf %6, %7 : vector<16x1536xf32>
    %9 = arith.truncf %8 : vector<16x1536xf32> to vector<16x1536xbf16>
    %c0_6 = arith.constant 0 : index
    %c0_7 = arith.constant 0 : index
    %10 = vector.load %arg5[%c0_6, %c0_7] : memref<1536x384xbf16, #tpu.memory_space<vmem>>, vector<1536x384xbf16>
    %cst_8 = arith.constant dense<0.000000e+00> : vector<16x384xf32>
    %11 = tpu.matmul %9, %10, %cst_8 {dimension_numbers = #tpu.dot_dimension_numbers<[1], [0], [0], [1], [0, 0, 1, 1], [], []>} : vector<16x1536xbf16>, vector<1536x384xbf16>, vector<16x384xf32> -> vector<16x384xf32>
    %c0_9 = arith.constant 0 : index
    %c0_10 = arith.constant 0 : index
    %12 = vector.load %arg6[%c0_9, %c0_10] : memref<1x384xf32, #tpu.memory_space<vmem>>, vector<1x384xf32>
    %13 = vector.broadcast %12 : vector<1x384xf32> to vector<16x384xf32>
    %14 = arith.addf %11, %13 : vector<16x384xf32>
    %c0_11 = arith.constant 0 : index
    %c0_12 = arith.constant 0 : index
    %15 = vector.load %arg7[%c0_11, %c0_12] : memref<16x384xf32, #tpu.memory_space<vmem>>, vector<16x384xf32>
    tpu.vector_store %arg7[%c0_11, %c0_12], %14 {strides = array<i32>} : memref<16x384xf32, #tpu.memory_space<vmem>>, vector<16x384xf32>,
    return
  }
  func.func @transform_0(%arg0: i32) -> i32 {
    %c0_i32 = arith.constant 0 : i32
    %c0_i32_0 = arith.constant 0 : i32
    return %c0_i32 : i32
  }
  func.func @transform_1(%arg0: i32) -> (i32, i32) {
    %c0_i32 = arith.constant 0 : i32
    %c0_i32_0 = arith.constant 0 : i32
    return %arg0, %c0_i32 : i32, i32
  }
  func.func @transform_2(%arg0: i32) -> (i32, i32) {
    %c0_i32 = arith.constant 0 : i32
    %c0_i32_0 = arith.constant 0 : i32
    %c0_i32_1 = arith.constant 0 : i32
    return %c0_i32, %c0_i32_0 : i32, i32
  }
  func.func @transform_3(%arg0: i32) -> (i32, i32) {
    %c0_i32 = arith.constant 0 : i32
    %c0_i32_0 = arith.constant 0 : i32
    %c0_i32_1 = arith.constant 0 : i32
    return %c0_i32, %c0_i32_0 : i32, i32
  }
  func.func @transform_4(%arg0: i32) -> (i32, i32) {
    %c0_i32 = arith.constant 0 : i32
    %c0_i32_0 = arith.constant 0 : i32
    %c0_i32_1 = arith.constant 0 : i32
    return %c0_i32, %c0_i32_0 : i32, i32
  }
  func.func @transform_5(%arg0: i32) -> (i32, i32) {
    %c0_i32 = arith.constant 0 : i32
    %c0_i32_0 = arith.constant 0 : i32
    %c0_i32_1 = arith.constant 0 : i32
    return %c0_i32, %c0_i32_0 : i32, i32
  }
  func.func @transform_6(%arg0: i32) -> (i32, i32) {
    %c0_i32 = arith.constant 0 : i32
    %c0_i32_0 = arith.constant 0 : i32
    return %arg0, %c0_i32 : i32, i32
  }
}

</mosaic_0001>

<bundles_post_ra>
// kernel: tpu_custom_call.1
= control target key start
LH: loop header
LB: loop body
LE: loop exit
PB: predicated region body
PF: predicated region fallthrough
CT: control target
= control target key end

     0   :  { %12 = vsyncpa [#allocation4], 0  ;;  %s6894_s0 = inlined_call_operand.<no memory space> [shape: s32[1], index: 0, kind: input, shape index: {}]   ;;  %s6895_s1 = inlined_call_operand.hbm [shape: f32[16,384], index: 1, kind: input, shape index: {}]   ;;  %s6896_s2 = inlined_call_operand.hbm [shape: bf16[384,1536], index: 2, kind: input, shape index: {}]   ;;  %s6897_s3 = inlined_call_operand.hbm [shape: f32[1,1536], index: 3, kind: input, shape index: {}]   ;;  %s6898_s4 = inlined_call_operand.hbm [shape: bf16[1536,384], index: 4, kind: input, shape index: {}]   ;;  %s6899_s5 = inlined_call_operand.hbm [shape: f32[1,384], index: 5, kind: input, shape index: {}]   ;;  %s6900_s6 = inlined_call_operand.hbm [shape: f32[16,384], index: 6, kind: output, shape index: {}]  }
   0x1   :  { %13 = vsyncpa [#allocation7], 0 }
   0x2   :  { %14 = vsyncpa [#allocation10], 0 }
   0x3   :  { %15 = vsyncpa [#allocation5], 0  ;;  %s6659_s0 = smov [#allocation6]   ;;  %s6519_s24 = scalar_lea.hbm %s6896_s2, 36864 }
   0x4   :  { %s35_s21 = sshll.u32 %s6659_s0, 4  ;;  %p6520_p0 = scmp.ne.s32.totalorder %s6896_s2, %s6519_s24  ;;  %s36_s21 = int_to_ptr.vmem [resolvable:$true] %s35_s21 }
   0x5   :  { %p6523_p1 = scmp.lt.u32.totalorder %s6519_s24, %s6896_s2 }
   0x7   :  { %p6525_p2 = pnand %p6523_p1, %p6520_p0 }
   0x9   :  { %6528 = shalt.err (!%p6525_p2)
}
   0xa   :  { %s6529_s29 = scalar_lea.vmem %s36_s21, 36864  ;;  %p6534_p4 = scmp.lt.s32.totalorder %s36_s21, %s36_s21 }
   0xb   :  { %p6530_p3 = scmp.ne.s32.totalorder %s36_s21, %s6529_s29  ;;  %p6535_p5 = scmp.lt.s32.totalorder %s6529_s29, %s6529_s29 }
   0xd   :  { %p6536_p6 = por %p6535_p5, %p6534_p4 }
   0xf   :  { %p6537_p7 = pnand %p6536_p6, %p6530_p3 }
  0x11   :  { %6540 = shalt.err (!%p6537_p7)
}
  0x12   :  { %s6660_s30 = smov 768   ;;  %s6661_s7 = smov 48  }
  0x13   :  { %41 = dma.hbm_to_vmem [thread:$0]  %s6896_s2, 36864, %s36_s21, [#allocation7], %s6660_s30, %s6660_s30, %s6661_s7  }
  0x14   :  { %s6662_s10 = smov [#allocation9]   ;;  %s6541_s14 = scalar_lea.hbm %s6898_s4, 36864 }
  0x15   :  { %s57_s11 = sshll.u32 %s6662_s10, 4  ;;  %p6542_p8 = scmp.ne.s32.totalorder %s6898_s4, %s6541_s14  ;;  %s58_s11 = int_to_ptr.vmem [resolvable:$true] %s57_s11 }
  0x16   :  { %p6545_p9 = scmp.lt.u32.totalorder %s6541_s14, %s6898_s4 }
  0x18   :  { %p6547_p10 = pnand %p6545_p9, %p6542_p8 }
  0x1a   :  { %6550 = shalt.err (!%p6547_p10)
}
  0x1b   :  { %s6551_s19 = scalar_lea.vmem %s58_s11, 36864  ;;  %p6556_p12 = scmp.lt.s32.totalorder %s58_s11, %s58_s11 }
  0x1c   :  { %p6552_p11 = scmp.ne.s32.totalorder %s58_s11, %s6551_s19  ;;  %p6557_p13 = scmp.lt.s32.totalorder %s6551_s19, %s6551_s19 }
  0x1e   :  { %p6558_p0 = por %p6557_p13, %p6556_p12 }
  0x20   :  { %p6559_p1 = pnand %p6558_p0, %p6552_p11 }
  0x22   :  { %6562 = shalt.err (!%p6559_p1)
}
  0x23   :  { %s6663_s2 = smov 192   ;;  %s6664_s20 = smov 12  }
  0x24   :  { %63 = dma.hbm_to_vmem [thread:$0]  %s6898_s4, 36864, %s58_s11, [#allocation10], %s6663_s2, %s6663_s2, %s6664_s20  }
  0x25   :  { %s6665_s22 = smov [#allocation3]   ;;  %s6563_s26 = scalar_lea.hbm %s6895_s1, 768 }
  0x26   :  { %s23_s23 = sshll.u32 %s6665_s22, 4  ;;  %p6564_p2 = scmp.ne.s32.totalorder %s6895_s1, %s6563_s26  ;;  %s24_s23 = int_to_ptr.vmem [resolvable:$true] %s23_s23 }
  0x27   :  { %p6567_p3 = scmp.lt.u32.totalorder %s6563_s26, %s6895_s1 }
  0x29   :  { %p6569_p4 = pnand %p6567_p3, %p6564_p2 }
  0x2b   :  { %6572 = shalt.err (!%p6569_p4)
}
  0x2c   :  { %s6573_s7 = scalar_lea.vmem %s24_s23, 768  ;;  %p6578_p6 = scmp.lt.s32.totalorder %s24_s23, %s24_s23 }
  0x2d   :  { %p6574_p5 = scmp.ne.s32.totalorder %s24_s23, %s6573_s7  ;;  %p6579_p7 = scmp.lt.s32.totalorder %s6573_s7, %s6573_s7 }
  0x2f   :  { %p6580_p8 = por %p6579_p7, %p6578_p6 }
  0x31   :  { %p6581_p9 = pnand %p6580_p8, %p6574_p5 }
  0x33   :  { %6584 = shalt.err (!%p6581_p9)
}
  0x34   :  { %s6666_s4 = smov 384   ;;  %s6667_s8 = smov 24  }
  0x35   :  { %29 = dma.hbm_to_vmem [thread:$0]  %s6895_s1, 768, %s24_s23, [#allocation4], %s6666_s4, %s6666_s4, %s6667_s8  }
  0x36   :  { %s6668_s11 = smov [#allocation8]   ;;  %s6669_s13 = smov [#allocation11]  }
  0x37   :  { %s48_s12 = sshll.u32 %s6668_s11, 4  ;;  %s70_s14 = sshll.u32 %s6669_s13, 4  ;;  %s49_s12 = int_to_ptr.vmem [resolvable:$true] %s48_s12  ;;  %s71_s14 = int_to_ptr.vmem [resolvable:$true] %s70_s14 }
  0x38   :  { %s6585_s17 = scalar_lea.hbm %s6897_s3, 192 }
  0x39   :  { %p6586_p10 = scmp.ne.s32.totalorder %s6897_s3, %s6585_s17  ;;  %p6589_p11 = scmp.lt.u32.totalorder %s6585_s17, %s6897_s3 }
  0x3b   :  { %p6591_p12 = pnand %p6589_p11, %p6586_p10 }
  0x3d   :  { %6594 = shalt.err (!%p6591_p12)
}
  0x3e   :  { %s6595_s1 = scalar_lea.vmem %s49_s12, 192  ;;  %p6600_p0 = scmp.lt.s32.totalorder %s49_s12, %s49_s12 }
  0x3f   :  { %p6596_p13 = scmp.ne.s32.totalorder %s49_s12, %s6595_s1  ;;  %p6601_p1 = scmp.lt.s32.totalorder %s6595_s1, %s6595_s1 }
  0x41   :  { %p6602_p2 = por %p6601_p1, %p6600_p0 }
  0x43   :  { %p6603_p3 = pnand %p6602_p2, %p6596_p13 }
  0x45   :  { %6606 = shalt.err (!%p6603_p3)
}
  0x46   :  { %51 = dma.hbm_to_vmem [thread:$0]  %s6897_s3, 192, %s49_s12, [#allocation7]  }
  0x47   :  { %s6607_s24 = scalar_lea.hbm %s6899_s5, 48 }
  0x48   :  { %p6608_p4 = scmp.ne.s32.totalorder %s6899_s5, %s6607_s24  ;;  %p6611_p5 = scmp.lt.u32.totalorder %s6607_s24, %s6899_s5 }
  0x4a   :  { %p6613_p6 = pnand %p6611_p5, %p6608_p4 }
  0x4c   :  { %6616 = shalt.err (!%p6613_p6)
}
  0x4d   :  { %s6617_s29 = scalar_lea.vmem %s71_s14, 48  ;;  %s6621_s30 = scalar_lea.vmem %s71_s14, 64 }
  0x4e   :  { %p6618_p7 = scmp.ne.s32.totalorder %s71_s14, %s6617_s29  ;;  %p6622_p8 = scmp.lt.s32.totalorder %s71_s14, %s71_s14 }
  0x4f   :  { %p6623_p9 = scmp.lt.s32.totalorder %s6621_s30, %s6617_s29 }
  0x51   :  { %p6624_p10 = por %p6623_p9, %p6622_p8 }
  0x53   :  { %p6625_p11 = pnand %p6624_p10, %p6618_p7 }
  0x55   :  { %6628 = shalt.err (!%p6625_p11)
}
  0x56   :  { %73 = dma.hbm_to_vmem [thread:$0]  %s6899_s5, 48, %s71_s14, [#allocation10]  }
  0x57   :  { %6651 = dma.done.wait [#allocation4], 768  }
  0x58   :  { %6652 = vsyncadd [#allocation4], 4294966528 }
  0x59   :  { %6653 = dma.done.wait [#allocation7], 37056  }
  0x5a   :  { %6654 = vsyncadd [#allocation7], 4294930240 }
  0x5b   :  { %6655 = dma.done.wait [#allocation10], 36912  }
  0x5c   :  { %6656 = vsyncadd [#allocation10], 4294930384  ;;  %v5702_v0 = vld [vmem:[#allocation6 + $0x4] ss:$48 sps:$4 sm:$0xff]   ;;  %v5704_v1 = vld [vmem:[#allocation6] ss:$48 sps:$4 sm:$0xff]  }
  0x5d   :  { %1891 = vmatprep.subr.bf16.mxu1 %v5702_v0  ;;  %v5705_v2 = vld [vmem:[#allocation6 + $0x64] ss:$48 sps:$4 sm:$0xff]   ;;  %v5707_v3 = vld [vmem:[#allocation6 + $0x60] ss:$48 sps:$4 sm:$0xff]   ;;  %v91_v18 = vld [vmem:[#allocation3 + $0x8] sm:$0xff]  ;;  %s6671_s5 = smov [#allocation12]  }
  0x5e   :  { %1892 = vmatpush1.bf16.msra.mxu1 %v5704_v1  ;;  %v5708_v4 = vld [vmem:[#allocation6 + $0xc4] ss:$48 sps:$4 sm:$0xff]   ;;  %v5710_v5 = vld [vmem:[#allocation6 + $0xc0] ss:$48 sps:$4 sm:$0xff]   ;;  %v93_v58 = vld [vmem:[#allocation3 + $0x18] sm:$0xff]  ;;  %s4895_s9 = sshll.u32 %s6671_s5, 4  ;;  %s4896_s9 = int_to_ptr.vmem [resolvable:$true] %s4895_s9 }
  0x5f   :  { %1893 = vmatprep.subr.bf16.mxu1 %v5705_v2  ;;  %v5711_v6 = vld [vmem:[#allocation6 + $0x124] ss:$48 sps:$4 sm:$0xff]   ;;  %v5713_v7 = vld [vmem:[#allocation6 + $0x120] ss:$48 sps:$4 sm:$0xff]   ;;  %s6629_s10 = scalar_lea.vmem %s4896_s9, 768  ;;  %p6634_p13 = scmp.lt.s32.totalorder %s4896_s9, %s4896_s9 }
  0x60   :  { %v5714_v8 = vld [vmem:[#allocation6 + $0x184] ss:$48 sps:$4 sm:$0xff]   ;;  %v5716_v9 = vld [vmem:[#allocation6 + $0x180] ss:$48 sps:$4 sm:$0xff]   ;;  %p6630_p12 = scmp.ne.s32.totalorder %s4896_s9, %s6629_s10  ;;  %p6635_p0 = scmp.lt.s32.totalorder %s6629_s10, %s6629_s10 }
  0x61   :  { %v5717_v10 = vld [vmem:[#allocation6 + $0x1e4] ss:$48 sps:$4 sm:$0xff]   ;;  %v5719_v11 = vld [vmem:[#allocation6 + $0x1e0] ss:$48 sps:$4 sm:$0xff]  }
  0x62   :  { %1894 = vmatpush1.bf16.msra.mxu1 %v5707_v3  ;;  %v5720_v12 = vld [vmem:[#allocation6 + $0x244] ss:$48 sps:$4 sm:$0xff]   ;;  %v5722_v14 = vld [vmem:[#allocation6 + $0x240] ss:$48 sps:$4 sm:$0xff]   ;;  %v6670_v3 = vmov 0   ;;  %p6636_p1 = por %p6635_p0, %p6634_p13 }
  0x63   :  { %1895 = vmatprep.subr.bf16.mxu1 %v5708_v4  ;;  %v5747_v13 = vld [vmem:[#allocation6 + $0x14] ss:$48 sps:$4 sm:$0xff]   ;;  %v5751_v16 = vld [vmem:[#allocation6 + $0x10] ss:$48 sps:$4 sm:$0xff]  }
  0x64   :  { %v5723_v15 = vld [vmem:[#allocation6 + $0x2a4] ss:$48 sps:$4 sm:$0xff]   ;;  %2063 = vmatprep.subr.bf16.mxu0 %v5747_v13  ;;  %v5758_v21 = vld [vmem:[#allocation6 + $0x70] ss:$48 sps:$4 sm:$0xff]   ;;  %p6637_p2 = pnand %p6636_p1, %p6630_p12 }
  0x65   :  { %v5753_v17 = vld [vmem:[#allocation6 + $0x74] ss:$48 sps:$4 sm:$0xff]   ;;  %2064 = vmatpush1.bf16.msra.mxu0 %v5751_v16  ;;  %v5725_v22 = vld [vmem:[#allocation6 + $0x2a0] ss:$48 sps:$4 sm:$0xff]  }
  0x66   :  { %1896 = vmatpush1.bf16.msra.mxu1 %v5710_v5  ;;  %v94_v19 = vld [vmem:[#allocation3 + $0x20] sm:$0xff]  ;;  %2065 = vmatprep.subr.bf16.mxu0 %v5753_v17 }
  0x67   :  { %1897 = vmatprep.subr.bf16.mxu1 %v5711_v6  ;;  %v6770_v20 = vpack.c.bf16 %v94_v19, %v91_v18  ;;  %v5759_v23 = vld [vmem:[#allocation6 + $0xd4] ss:$48 sps:$4 sm:$0xff]   ;;  %v5764_v25 = vld [vmem:[#allocation6 + $0xd0] ss:$48 sps:$4 sm:$0xff]  }
  0x68   :  { %v5726_v24 = vld [vmem:[#allocation6 + $0x304] ss:$48 sps:$4 sm:$0xff]   ;;  %v5728_v27 = vld [vmem:[#allocation6 + $0x300] ss:$48 sps:$4 sm:$0xff]  }
  0x69   :  { %1923 = vmatprep.mubr.bf16.mxu1 %v6770_v20  ;;  %2066 = vmatpush1.bf16.msra.mxu0 %v5758_v21  ;;  %v5765_v26 = vld [vmem:[#allocation6 + $0x134] ss:$48 sps:$4 sm:$0xff]   ;;  %v5770_v29 = vld [vmem:[#allocation6 + $0x130] ss:$48 sps:$4 sm:$0xff]  }
  0x6a   :  { %1898 = vmatpush1.bf16.msra.mxu1 %v5713_v7  ;;  %2067 = vmatprep.subr.bf16.mxu0 %v5759_v23  ;;  %v5729_v28 = vld [vmem:[#allocation6 + $0x364] ss:$48 sps:$4 sm:$0xff]   ;;  %v5731_v31 = vld [vmem:[#allocation6 + $0x360] ss:$48 sps:$4 sm:$0xff]  }
  0x6b   :  { %1899 = vmatprep.subr.bf16.mxu1 %v5714_v8  ;;  %2095 = vmatprep.mubr.bf16.mxu0 %v6770_v20  ;;  %v5771_v30 = vld [vmem:[#allocation6 + $0x194] ss:$48 sps:$4 sm:$0xff]   ;;  %v5776_v33 = vld [vmem:[#allocation6 + $0x190] ss:$48 sps:$4 sm:$0xff]  }
  0x6c   :  { %v5732_v32 = vld [vmem:[#allocation6 + $0x3c4] ss:$48 sps:$4 sm:$0xff]   ;;  %v5734_v35 = vld [vmem:[#allocation6 + $0x3c0] ss:$48 sps:$4 sm:$0xff]  }
  0x6d   :  { %2068 = vmatpush1.bf16.msra.mxu0 %v5764_v25  ;;  %v5777_v34 = vld [vmem:[#allocation6 + $0x1f4] ss:$48 sps:$4 sm:$0xff]   ;;  %v5782_v37 = vld [vmem:[#allocation6 + $0x1f0] ss:$48 sps:$4 sm:$0xff]  }
  0x6e   :  { %1900 = vmatpush1.bf16.msra.mxu1 %v5716_v9  ;;  %2069 = vmatprep.subr.bf16.mxu0 %v5765_v26  ;;  %v5735_v36 = vld [vmem:[#allocation6 + $0x424] ss:$48 sps:$4 sm:$0xff]   ;;  %v5737_v39 = vld [vmem:[#allocation6 + $0x420] ss:$48 sps:$4 sm:$0xff]  }
  0x6f   :  { %1901 = vmatprep.subr.bf16.mxu1 %v5717_v10  ;;  %v5783_v38 = vld [vmem:[#allocation6 + $0x254] ss:$48 sps:$4 sm:$0xff]   ;;  %v5788_v41 = vld [vmem:[#allocation6 + $0x250] ss:$48 sps:$4 sm:$0xff]  }
  0x70   :  { %v5738_v40 = vld [vmem:[#allocation6 + $0x484] ss:$48 sps:$4 sm:$0xff]   ;;  %v5740_v43 = vld [vmem:[#allocation6 + $0x480] ss:$48 sps:$4 sm:$0xff]  }
  0x71   :  { %2070 = vmatpush1.bf16.msra.mxu0 %v5770_v29  ;;  %v5789_v42 = vld [vmem:[#allocation6 + $0x2b4] ss:$48 sps:$4 sm:$0xff]   ;;  %v5794_v45 = vld [vmem:[#allocation6 + $0x2b0] ss:$48 sps:$4 sm:$0xff]  }
  0x72   :  { %1902 = vmatpush1.bf16.msra.mxu1 %v5719_v11  ;;  %2071 = vmatprep.subr.bf16.mxu0 %v5771_v30  ;;  %v5741_v44 = vld [vmem:[#allocation6 + $0x4e4] ss:$48 sps:$4 sm:$0xff]   ;;  %v5743_v47 = vld [vmem:[#allocation6 + $0x4e0] ss:$48 sps:$4 sm:$0xff]   ;;  %v95_v30 = vld [vmem:[#allocation3 + $0x28] sm:$0xff] }
  0x73   :  { %1903 = vmatprep.subr.bf16.mxu1 %v5720_v12  ;;  %v5795_v46 = vld [vmem:[#allocation6 + $0x314] ss:$48 sps:$4 sm:$0xff]   ;;  %v5800_v49 = vld [vmem:[#allocation6 + $0x310] ss:$48 sps:$4 sm:$0xff]  }
  0x74   :  { %v5744_v48 = vld [vmem:[#allocation6 + $0x544] ss:$48 sps:$4 sm:$0xff]   ;;  %v5746_v51 = vld [vmem:[#allocation6 + $0x540] ss:$48 sps:$4 sm:$0xff]  }
  0x75   :  { %2072 = vmatpush1.bf16.msra.mxu0 %v5776_v33  ;;  %v5801_v50 = vld [vmem:[#allocation6 + $0x374] ss:$48 sps:$4 sm:$0xff]   ;;  %v5806_v53 = vld [vmem:[#allocation6 + $0x370] ss:$48 sps:$4 sm:$0xff]  }
  0x76   :  { %1904 = vmatpush1.bf16.msra.mxu1 %v5722_v14  ;;  %2073 = vmatprep.subr.bf16.mxu0 %v5777_v34  ;;  %v5749_v52 = vld [vmem:[#allocation6 + $0x5a4] ss:$48 sps:$4 sm:$0xff]   ;;  %v5752_v54 = vld [vmem:[#allocation6 + $0x5a0] ss:$48 sps:$4 sm:$0xff]  }
  0x77   :  { %1905 = vmatprep.subr.bf16.mxu1 %v5723_v15  ;;  %v5807_v55 = vld [vmem:[#allocation6 + $0x3d4] ss:$48 sps:$4 sm:$0xff]   ;;  %v5812_v59 = vld [vmem:[#allocation6 + $0x3d0] ss:$48 sps:$4 sm:$0xff]  }
  0x78   :  { %v5757_v56 = vld [vmem:[#allocation6 + $0x604] ss:$48 sps:$4 sm:$0xff]   ;;  %v5755_v62 = vld [vmem:[#allocation6 + $0x600] ss:$48 sps:$4 sm:$0xff]  }
  0x79   :  { %2074 = vmatpush1.bf16.msra.mxu0 %v5782_v37  ;;  %v90_v57 = vld [vmem:[#allocation3] sm:$0xff]  ;;  %v92_v29 = vld [vmem:[#allocation3 + $0x10] sm:$0xff] }
  0x7a   :  { %1906 = vmatpush1.bf16.msra.mxu1 %v5725_v22  ;;  %2075 = vmatprep.subr.bf16.mxu0 %v5783_v38  ;;  %v5813_v60 = vld [vmem:[#allocation6 + $0x434] ss:$48 sps:$4 sm:$0xff]   ;;  %v6774_v61 = vpack.c.bf16 %v93_v58, %v90_v57  ;;  %v5818_v0 = vld [vmem:[#allocation6 + $0x430] ss:$48 sps:$4 sm:$0xff]   ;;  %v6780_v34 = vpack.c.bf16 %v95_v30, %v92_v29  ;;  %v5888_v30 = vld [vmem:[#allocation6 + $0x548] ss:$48 sps:$4 sm:$0xff]  }
  0x7b   :  { %1907 = vmatprep.subr.bf16.mxu1 %v5726_v24  ;;  %v5763_v63 = vld [vmem:[#allocation6 + $0x664] ss:$48 sps:$4 sm:$0xff]   ;;  %v5761_v2 = vld [vmem:[#allocation6 + $0x660] ss:$48 sps:$4 sm:$0xff]  }
  0x7c   :  { %v5819_v1 = vld [vmem:[#allocation6 + $0x494] ss:$48 sps:$4 sm:$0xff]   ;;  %v5824_v5 = vld [vmem:[#allocation6 + $0x490] ss:$48 sps:$4 sm:$0xff]  }
  0x7d   :  { %2076 = vmatpush1.bf16.msra.mxu0 %v5788_v41  ;;  %v5769_v4 = vld [vmem:[#allocation6 + $0x6c4] ss:$48 sps:$4 sm:$0xff]   ;;  %v5767_v7 = vld [vmem:[#allocation6 + $0x6c0] ss:$48 sps:$4 sm:$0xff]  }
  0x7e   :  { %1908 = vmatpush1.bf16.msra.mxu1 %v5728_v27  ;;  %2077 = vmatprep.subr.bf16.mxu0 %v5789_v42  ;;  %v5825_v6 = vld [vmem:[#allocation6 + $0x4f4] ss:$48 sps:$4 sm:$0xff]   ;;  %v5830_v9 = vld [vmem:[#allocation6 + $0x4f0] ss:$48 sps:$4 sm:$0xff]  }
  0x7f   :  { %1909 = vmatprep.subr.bf16.mxu1 %v5729_v28  ;;  %v5775_v8 = vld [vmem:[#allocation6 + $0x724] ss:$48 sps:$4 sm:$0xff]   ;;  %v5773_v11 = vld [vmem:[#allocation6 + $0x720] ss:$48 sps:$4 sm:$0xff]  }
  0x80   :  { %v5831_v10 = vld [vmem:[#allocation6 + $0x554] ss:$48 sps:$4 sm:$0xff]   ;;  %v5836_v13 = vld [vmem:[#allocation6 + $0x550] ss:$48 sps:$4 sm:$0xff]  }
  0x81   :  { %2078 = vmatpush1.bf16.msra.mxu0 %v5794_v45  ;;  %v5781_v12 = vld [vmem:[#allocation6 + $0x784] ss:$48 sps:$4 sm:$0xff]   ;;  %v5779_v15 = vld [vmem:[#allocation6 + $0x780] ss:$48 sps:$4 sm:$0xff]  }
  0x82   :  { %1910 = vmatpush1.bf16.msra.mxu1 %v5731_v31  ;;  %2079 = vmatprep.subr.bf16.mxu0 %v5795_v46  ;;  %v5837_v14 = vld [vmem:[#allocation6 + $0x5b4] ss:$48 sps:$4 sm:$0xff]   ;;  %v5842_v17 = vld [vmem:[#allocation6 + $0x5b0] ss:$48 sps:$4 sm:$0xff]   ;;  %v5805_v31 = vld [vmem:[#allocation6 + $0xc] ss:$48 sps:$4 sm:$0xff]  }
  0x83   :  { %1911 = vmatprep.subr.bf16.mxu1 %v5732_v32  ;;  %v5787_v16 = vld [vmem:[#allocation6 + $0x7e4] ss:$48 sps:$4 sm:$0xff]   ;;  %v5785_v19 = vld [vmem:[#allocation6 + $0x7e0] ss:$48 sps:$4 sm:$0xff]  }
  0x84   :  { %v5845_v18 = vld [vmem:[#allocation6 + $0x614] ss:$48 sps:$4 sm:$0xff]   ;;  %v5843_v22 = vld [vmem:[#allocation6 + $0x610] ss:$48 sps:$4 sm:$0xff]  }
  0x85   :  { %2080 = vmatpush1.bf16.msra.mxu0 %v5800_v49  ;;  %v5793_v21 = vld [vmem:[#allocation6 + $0x844] ss:$48 sps:$4 sm:$0xff]   ;;  %v5791_v24 = vld [vmem:[#allocation6 + $0x840] ss:$48 sps:$4 sm:$0xff]  }
  0x86   :  { %1912 = vmatpush1.bf16.msra.mxu1 %v5734_v35  ;;  %2081 = vmatprep.subr.bf16.mxu0 %v5801_v50  ;;  %v5851_v23 = vld [vmem:[#allocation6 + $0x674] ss:$48 sps:$4 sm:$0xff]   ;;  %v5849_v26 = vld [vmem:[#allocation6 + $0x670] ss:$48 sps:$4 sm:$0xff]   ;;  %v5803_v35 = vld [vmem:[#allocation6 + $0x8] ss:$48 sps:$4 sm:$0xff]  }
  0x87   :  { %1913 = vmatprep.subr.bf16.mxu1 %v5735_v36  ;;  %v5799_v25 = vld [vmem:[#allocation6 + $0x8a4] ss:$48 sps:$4 sm:$0xff]   ;;  %v5797_v27 = vld [vmem:[#allocation6 + $0x8a0] ss:$48 sps:$4 sm:$0xff]   ;;  %v5811_v36 = vld [vmem:[#allocation6 + $0x6c] ss:$48 sps:$4 sm:$0xff]  }
  0x88   :  { %v5857_v28 = vld [vmem:[#allocation6 + $0x6d4] ss:$48 sps:$4 sm:$0xff]   ;;  %v5855_v32 = vld [vmem:[#allocation6 + $0x6d0] ss:$48 sps:$4 sm:$0xff]  }
  0x89   :  { %2082 = vmatpush1.bf16.msra.mxu0 %v5806_v53  ;;  %v5863_v33 = vld [vmem:[#allocation6 + $0x734] ss:$48 sps:$4 sm:$0xff]   ;;  %v5861_v37 = vld [vmem:[#allocation6 + $0x730] ss:$48 sps:$4 sm:$0xff]  }
  0x8a   :  { %1914 = vmatpush1.bf16.msra.mxu1 %v5737_v39  ;;  %2083 = vmatprep.subr.bf16.mxu0 %v5807_v55  ;;  %v5869_v38 = vld [vmem:[#allocation6 + $0x794] ss:$48 sps:$4 sm:$0xff]   ;;  %v5809_v39 = vld [vmem:[#allocation6 + $0x68] ss:$48 sps:$4 sm:$0xff]   ;;  %v5867_v41 = vld [vmem:[#allocation6 + $0x790] ss:$48 sps:$4 sm:$0xff]  }
  0x8b   :  { %1915 = vmatprep.subr.bf16.mxu1 %v5738_v40  ;;  %v5817_v40 = vld [vmem:[#allocation6 + $0xcc] ss:$48 sps:$4 sm:$0xff]   ;;  %v5875_v42 = vld [vmem:[#allocation6 + $0x7f4] ss:$48 sps:$4 sm:$0xff]   ;;  %v5873_v45 = vld [vmem:[#allocation6 + $0x7f0] ss:$48 sps:$4 sm:$0xff]  }
  0x8c   :  { %v5881_v46 = vld [vmem:[#allocation6 + $0x854] ss:$48 sps:$4 sm:$0xff]   ;;  %v5879_v49 = vld [vmem:[#allocation6 + $0x850] ss:$48 sps:$4 sm:$0xff]   ;;  %v5833_v55 = vld [vmem:[#allocation6 + $0x1e8] ss:$48 sps:$4 sm:$0xff]  }
  0x8d   :  { %2084 = vmatpush1.bf16.msra.mxu0 %v5812_v59  ;;  %v5887_v50 = vld [vmem:[#allocation6 + $0x8b4] ss:$48 sps:$4 sm:$0xff]   ;;  %v5885_v53 = vld [vmem:[#allocation6 + $0x8b0] ss:$48 sps:$4 sm:$0xff]   ;;  %v5839_v59 = vld [vmem:[#allocation6 + $0x248] ss:$48 sps:$4 sm:$0xff]  }
  0x8e   :  { %1916 = vmatpush1.bf16.msra.mxu1 %v5740_v43  ;;  %2085 = vmatprep.subr.bf16.mxu0 %v5813_v60  ;;  %v5815_v43 = vld [vmem:[#allocation6 + $0xc8] ss:$48 sps:$4 sm:$0xff]   ;;  %v5891_v57 = vld [vmem:[#allocation6 + $0x20] ss:$48 sps:$4 sm:$0xff]   ;;  %v5899_v58 = vld [vmem:[#allocation6 + $0x84] ss:$48 sps:$4 sm:$0xff]  }
  0x8f   :  { %1917 = vmatprep.subr.bf16.mxu1 %v5741_v44  ;;  %v5823_v44 = vld [vmem:[#allocation6 + $0x12c] ss:$48 sps:$4 sm:$0xff]   ;;  %v5947_v29 = vld [vmem:[#allocation6 + $0x384] ss:$48 sps:$4 sm:$0xff]  }
  0x90   :  { %v5848_v60 = vld [vmem:[#allocation6 + $0x2ac] ss:$48 sps:$4 sm:$0xff]  }
  0x91   :  { %2086 = vmatpush1.bf16.msra.mxu0 %v5818_v0  ;;  %v5846_v0 = vld [vmem:[#allocation6 + $0x2a8] ss:$48 sps:$4 sm:$0xff]  }
  0x92   :  { %1918 = vmatpush1.bf16.msra.mxu1 %v5743_v47  ;;  %2087 = vmatprep.subr.bf16.mxu0 %v5819_v1  ;;  %v5821_v47 = vld [vmem:[#allocation6 + $0x128] ss:$48 sps:$4 sm:$0xff]   ;;  %v5854_v1 = vld [vmem:[#allocation6 + $0x30c] ss:$48 sps:$4 sm:$0xff]  }
  0x93   :  { %1919 = vmatprep.subr.bf16.mxu1 %v5744_v48  ;;  %v5829_v48 = vld [vmem:[#allocation6 + $0x18c] ss:$48 sps:$4 sm:$0xff]  }
  0x95   :  { %2088 = vmatpush1.bf16.msra.mxu0 %v5824_v5  ;;  %v5852_v5 = vld [vmem:[#allocation6 + $0x308] ss:$48 sps:$4 sm:$0xff]  }
  0x96   :  { %1920 = vmatpush1.bf16.msra.mxu1 %v5746_v51  ;;  %2089 = vmatprep.subr.bf16.mxu0 %v5825_v6  ;;  %v5827_v51 = vld [vmem:[#allocation6 + $0x188] ss:$48 sps:$4 sm:$0xff]   ;;  %v5860_v6 = vld [vmem:[#allocation6 + $0x36c] ss:$48 sps:$4 sm:$0xff]  }
  0x97   :  { %1921 = vmatprep.subr.bf16.mxu1 %v5749_v52  ;;  %v5835_v52 = vld [vmem:[#allocation6 + $0x1ec] ss:$48 sps:$4 sm:$0xff]  }
  0x99   :  { %2090 = vmatpush1.bf16.msra.mxu0 %v5830_v9  ;;  %v5858_v9 = vld [vmem:[#allocation6 + $0x368] ss:$48 sps:$4 sm:$0xff]  }
  0x9a   :  { %1922 = vmatpush1.bf16.msra.mxu1 %v5752_v54  ;;  %2091 = vmatprep.subr.bf16.mxu0 %v5831_v10  ;;  %v5893_v54 = vld [vmem:[#allocation6 + $0x24] ss:$48 sps:$4 sm:$0xff]   ;;  %v5866_v10 = vld [vmem:[#allocation6 + $0x3cc] ss:$48 sps:$4 sm:$0xff]  }
  0x9b   :  { %1934 = vmatprep.subr.bf16.mxu1 %v5757_v56  ;;  %v5841_v56 = vld [vmem:[#allocation6 + $0x24c] ss:$48 sps:$4 sm:$0xff]  }
  0x9d   :  { %1924 = vmatmul.mubr.bf16.vlgmr.msra.gmra.mrb[0].mxu1 %v6774_v61  ;;  %2092 = vmatpush1.bf16.msra.mxu0 %v5836_v13  ;;  %v5864_v13 = vld [vmem:[#allocation6 + $0x3c8] ss:$48 sps:$4 sm:$0xff]  }
  0x9e   :  { %1935 = vmatpush1.bf16.msra.mxu1 %v5755_v62  ;;  %1966 = vmatprep.mubr.bf16.mxu1 %v6670_v3  ;;  %v5897_v62 = vld [vmem:[#allocation6 + $0x80] ss:$48 sps:$4 sm:$0xff]  }
  0x9f   :  { %1936 = vmatprep.subr.bf16.mxu1 %v5763_v63  ;;  %2093 = vmatprep.subr.bf16.mxu0 %v5837_v14  ;;  %v5905_v63 = vld [vmem:[#allocation6 + $0xe4] ss:$48 sps:$4 sm:$0xff]   ;;  %v5872_v14 = vld [vmem:[#allocation6 + $0x42c] ss:$48 sps:$4 sm:$0xff]  }
  0xa1   :  { %2094 = vmatpush1.bf16.msra.mxu0 %v5842_v17  ;;  %v5870_v17 = vld [vmem:[#allocation6 + $0x428] ss:$48 sps:$4 sm:$0xff]  }
  0xa2   :  { %1937 = vmatpush1.bf16.msra.mxu1 %v5761_v2  ;;  %2106 = vmatprep.subr.bf16.mxu0 %v5845_v18  ;;  %v5903_v2 = vld [vmem:[#allocation6 + $0xe0] ss:$48 sps:$4 sm:$0xff]   ;;  %v5878_v18 = vld [vmem:[#allocation6 + $0x48c] ss:$48 sps:$4 sm:$0xff]  }
  0xa3   :  { %1938 = vmatprep.subr.bf16.mxu1 %v5769_v4  ;;  %v5911_v4 = vld [vmem:[#allocation6 + $0x144] ss:$48 sps:$4 sm:$0xff]  }
  0xa4   :  { %2096 = vmatmul.mubr.bf16.vlgmr.msra.gmra.mrb[0].mxu0 %v6774_v61 }
  0xa5   :  { %2107 = vmatpush1.bf16.msra.mxu0 %v5843_v22  ;;  %2138 = vmatprep.mubr.bf16.mxu0 %v6670_v3  ;;  %v5876_v22 = vld [vmem:[#allocation6 + $0x488] ss:$48 sps:$4 sm:$0xff]  }
  0xa6   :  { %1939 = vmatpush1.bf16.msra.mxu1 %v5767_v7  ;;  %2108 = vmatprep.subr.bf16.mxu0 %v5851_v23  ;;  %v5909_v7 = vld [vmem:[#allocation6 + $0x140] ss:$48 sps:$4 sm:$0xff]   ;;  %v5884_v23 = vld [vmem:[#allocation6 + $0x4ec] ss:$48 sps:$4 sm:$0xff]  }
  0xa7   :  { %1940 = vmatprep.subr.bf16.mxu1 %v5775_v8  ;;  %v5917_v8 = vld [vmem:[#allocation6 + $0x1a4] ss:$48 sps:$4 sm:$0xff]  }
  0xa9   :  { %2109 = vmatpush1.bf16.msra.mxu0 %v5849_v26  ;;  %v5882_v26 = vld [vmem:[#allocation6 + $0x4e8] ss:$48 sps:$4 sm:$0xff]  }
  0xaa   :  { %1941 = vmatpush1.bf16.msra.mxu1 %v5773_v11  ;;  %2110 = vmatprep.subr.bf16.mxu0 %v5857_v28  ;;  %v5915_v11 = vld [vmem:[#allocation6 + $0x1a0] ss:$48 sps:$4 sm:$0xff]  }
  0xab   :  { %1942 = vmatprep.subr.bf16.mxu1 %v5781_v12  ;;  %v5923_v12 = vld [vmem:[#allocation6 + $0x204] ss:$48 sps:$4 sm:$0xff]   ;;  %v5939_v28 = vld [vmem:[#allocation6 + $0x320] ss:$48 sps:$4 sm:$0xff]  }
  0xad   :  { %2111 = vmatpush1.bf16.msra.mxu0 %v5855_v32  ;;  %v5945_v32 = vld [vmem:[#allocation6 + $0x380] ss:$48 sps:$4 sm:$0xff]  }
  0xae   :  { %1943 = vmatpush1.bf16.msra.mxu1 %v5779_v15  ;;  %2112 = vmatprep.subr.bf16.mxu0 %v5863_v33  ;;  %v5921_v15 = vld [vmem:[#allocation6 + $0x200] ss:$48 sps:$4 sm:$0xff]   ;;  %v5953_v33 = vld [vmem:[#allocation6 + $0x3e4] ss:$48 sps:$4 sm:$0xff]  }
  0xaf   :  { %1944 = vmatprep.subr.bf16.mxu1 %v5787_v16  ;;  %v5929_v16 = vld [vmem:[#allocation6 + $0x264] ss:$48 sps:$4 sm:$0xff]  }
  0xb1   :  { %2113 = vmatpush1.bf16.msra.mxu0 %v5861_v37  ;;  %v5951_v37 = vld [vmem:[#allocation6 + $0x3e0] ss:$48 sps:$4 sm:$0xff]  }
  0xb2   :  { %1945 = vmatpush1.bf16.msra.mxu1 %v5785_v19  ;;  %2114 = vmatprep.subr.bf16.mxu0 %v5869_v38  ;;  %v5927_v19 = vld [vmem:[#allocation6 + $0x260] ss:$48 sps:$4 sm:$0xff]   ;;  %v5959_v38 = vld [vmem:[#allocation6 + $0x444] ss:$48 sps:$4 sm:$0xff]  }
  0xb3   :  { %1946 = vmatprep.subr.bf16.mxu1 %v5793_v21  ;;  %v5935_v21 = vld [vmem:[#allocation6 + $0x2c4] ss:$48 sps:$4 sm:$0xff]  }
  0xb5   :  { %2115 = vmatpush1.bf16.msra.mxu0 %v5867_v41  ;;  %v5957_v41 = vld [vmem:[#allocation6 + $0x440] ss:$48 sps:$4 sm:$0xff]  }
  0xb6   :  { %1947 = vmatpush1.bf16.msra.mxu1 %v5791_v24  ;;  %2116 = vmatprep.subr.bf16.mxu0 %v5875_v42  ;;  %v5933_v24 = vld [vmem:[#allocation6 + $0x2c0] ss:$48 sps:$4 sm:$0xff]   ;;  %v5965_v42 = vld [vmem:[#allocation6 + $0x4a4] ss:$48 sps:$4 sm:$0xff]  }
  0xb7   :  { %1948 = vmatprep.subr.bf16.mxu1 %v5799_v25  ;;  %v5941_v25 = vld [vmem:[#allocation6 + $0x324] ss:$48 sps:$4 sm:$0xff]  }
  0xb9   :  { %2117 = vmatpush1.bf16.msra.mxu0 %v5873_v45  ;;  %v5963_v45 = vld [vmem:[#allocation6 + $0x4a0] ss:$48 sps:$4 sm:$0xff]  }
  0xba   :  { %1949 = vmatpush1.bf16.msra.mxu1 %v5797_v27  ;;  %2118 = vmatprep.subr.bf16.mxu0 %v5881_v46  ;;  %v5890_v27 = vld [vmem:[#allocation6 + $0x54c] ss:$48 sps:$4 sm:$0xff]   ;;  %v5971_v46 = vld [vmem:[#allocation6 + $0x504] ss:$48 sps:$4 sm:$0xff]  }
  0xbb   :  { %1977 = vmatprep.subr.bf16.mxu1 %v5805_v31  ;;  %v5896_v31 = vld [vmem:[#allocation6 + $0x5ac] ss:$48 sps:$4 sm:$0xff]  }
  0xbd   :  { %1967 = vmatmul.mubr.bf16.vlgmr.msra.gmra.mrb[0].mxu1 %v6780_v34  ;;  %2119 = vmatpush1.bf16.msra.mxu0 %v5879_v49  ;;  %v5969_v49 = vld [vmem:[#allocation6 + $0x500] ss:$48 sps:$4 sm:$0xff]  }
  0xbe   :  { %1978 = vmatpush1.bf16.msra.mxu1 %v5803_v35  ;;  %2009 = vmatprep.mubr.bf16.mxu1 %v6770_v20  ;;  %v5894_v35 = vld [vmem:[#allocation6 + $0x5a8] ss:$48 sps:$4 sm:$0xff]  }
  0xbf   :  { %1979 = vmatprep.subr.bf16.mxu1 %v5811_v36  ;;  %2120 = vmatprep.subr.bf16.mxu0 %v5887_v50  ;;  %v5902_v36 = vld [vmem:[#allocation6 + $0x60c] ss:$48 sps:$4 sm:$0xff]   ;;  %v5977_v50 = vld [vmem:[#allocation6 + $0x564] ss:$48 sps:$4 sm:$0xff]  }
  0xc1   :  { %2121 = vmatpush1.bf16.msra.mxu0 %v5885_v53  ;;  %v5975_v53 = vld [vmem:[#allocation6 + $0x560] ss:$48 sps:$4 sm:$0xff]  }
  0xc2   :  { %1980 = vmatpush1.bf16.msra.mxu1 %v5809_v39  ;;  %2235 = vmatprep.subr.bf16.mxu0 %v5893_v54  ;;  %v5900_v39 = vld [vmem:[#allocation6 + $0x608] ss:$48 sps:$4 sm:$0xff]   ;;  %v5983_v54 = vld [vmem:[#allocation6 + $0x5c4] ss:$48 sps:$4 sm:$0xff]  }
  0xc3   :  { %1981 = vmatprep.subr.bf16.mxu1 %v5817_v40  ;;  %v5908_v40 = vld [vmem:[#allocation6 + $0x66c] ss:$48 sps:$4 sm:$0xff]  }
  0xc4   :  { %2139 = vmatmul.mubr.bf16.vlgmr.msra.gmra.mrb[0].mxu0 %v6780_v34 }
  0xc5   :  { %2236 = vmatpush1.bf16.msra.mxu0 %v5891_v57  ;;  %2267 = vmatprep.mubr.bf16.mxu0 %v6770_v20  ;;  %v5981_v57 = vld [vmem:[#allocation6 + $0x5c0] ss:$48 sps:$4 sm:$0xff]  }
  0xc6   :  { %1982 = vmatpush1.bf16.msra.mxu1 %v5815_v43  ;;  %2237 = vmatprep.subr.bf16.mxu0 %v5899_v58  ;;  %v5906_v43 = vld [vmem:[#allocation6 + $0x668] ss:$48 sps:$4 sm:$0xff]   ;;  %v5989_v58 = vld [vmem:[#allocation6 + $0x624] ss:$48 sps:$4 sm:$0xff]  }
  0xc7   :  { %1983 = vmatprep.subr.bf16.mxu1 %v5823_v44  ;;  %v5914_v44 = vld [vmem:[#allocation6 + $0x6cc] ss:$48 sps:$4 sm:$0xff]  }
  0xc9   :  { %2238 = vmatpush1.bf16.msra.mxu0 %v5897_v62  ;;  %v5987_v62 = vld [vmem:[#allocation6 + $0x620] ss:$48 sps:$4 sm:$0xff]  }
  0xca   :  { %1984 = vmatpush1.bf16.msra.mxu1 %v5821_v47  ;;  %2239 = vmatprep.subr.bf16.mxu0 %v5905_v63  ;;  %v5912_v47 = vld [vmem:[#allocation6 + $0x6c8] ss:$48 sps:$4 sm:$0xff]   ;;  %v5995_v63 = vld [vmem:[#allocation6 + $0x684] ss:$48 sps:$4 sm:$0xff]  }
  0xcb   :  { %1985 = vmatprep.subr.bf16.mxu1 %v5829_v48  ;;  %v5920_v48 = vld [vmem:[#allocation6 + $0x72c] ss:$48 sps:$4 sm:$0xff]  }
  0xcd   :  { %2240 = vmatpush1.bf16.msra.mxu0 %v5903_v2  ;;  %v5993_v2 = vld [vmem:[#allocation6 + $0x680] ss:$48 sps:$4 sm:$0xff]  }
  0xce   :  { %1986 = vmatpush1.bf16.msra.mxu1 %v5827_v51  ;;  %2241 = vmatprep.subr.bf16.mxu0 %v5911_v4  ;;  %v5918_v51 = vld [vmem:[#allocation6 + $0x728] ss:$48 sps:$4 sm:$0xff]   ;;  %v6001_v4 = vld [vmem:[#allocation6 + $0x6e4] ss:$48 sps:$4 sm:$0xff]  }
  0xcf   :  { %1987 = vmatprep.subr.bf16.mxu1 %v5835_v52  ;;  %v5926_v52 = vld [vmem:[#allocation6 + $0x78c] ss:$48 sps:$4 sm:$0xff]  }
  0xd1   :  { %2242 = vmatpush1.bf16.msra.mxu0 %v5909_v7  ;;  %v5999_v7 = vld [vmem:[#allocation6 + $0x6e0] ss:$48 sps:$4 sm:$0xff]  }
  0xd2   :  { %1988 = vmatpush1.bf16.msra.mxu1 %v5833_v55  ;;  %2243 = vmatprep.subr.bf16.mxu0 %v5917_v8  ;;  %v5924_v55 = vld [vmem:[#allocation6 + $0x788] ss:$48 sps:$4 sm:$0xff]   ;;  %v6007_v8 = vld [vmem:[#allocation6 + $0x744] ss:$48 sps:$4 sm:$0xff]  }
  0xd3   :  { %1989 = vmatprep.subr.bf16.mxu1 %v5841_v56  ;;  %v5932_v56 = vld [vmem:[#allocation6 + $0x7ec] ss:$48 sps:$4 sm:$0xff]  }
  0xd5   :  { %2244 = vmatpush1.bf16.msra.mxu0 %v5915_v11  ;;  %v6005_v11 = vld [vmem:[#allocation6 + $0x740] ss:$48 sps:$4 sm:$0xff]  }
  0xd6   :  { %1990 = vmatpush1.bf16.msra.mxu1 %v5839_v59  ;;  %2245 = vmatprep.subr.bf16.mxu0 %v5923_v12  ;;  %v5930_v59 = vld [vmem:[#allocation6 + $0x7e8] ss:$48 sps:$4 sm:$0xff]   ;;  %v6013_v12 = vld [vmem:[#allocation6 + $0x7a4] ss:$48 sps:$4 sm:$0xff]  }
  0xd7   :  { %1991 = vmatprep.subr.bf16.mxu1 %v5848_v60  ;;  %v5938_v60 = vld [vmem:[#allocation6 + $0x84c] ss:$48 sps:$4 sm:$0xff]  }
  0xd9   :  { %2246 = vmatpush1.bf16.msra.mxu0 %v5921_v15  ;;  %v6011_v15 = vld [vmem:[#allocation6 + $0x7a0] ss:$48 sps:$4 sm:$0xff]  }
  0xda   :  { %1992 = vmatpush1.bf16.msra.mxu1 %v5846_v0  ;;  %2247 = vmatprep.subr.bf16.mxu0 %v5929_v16  ;;  %v5936_v0 = vld [vmem:[#allocation6 + $0x848] ss:$48 sps:$4 sm:$0xff]   ;;  %v6019_v16 = vld [vmem:[#allocation6 + $0x804] ss:$48 sps:$4 sm:$0xff]  }
  0xdb   :  { %1993 = vmatprep.subr.bf16.mxu1 %v5854_v1  ;;  %v5944_v1 = vld [vmem:[#allocation6 + $0x8ac] ss:$48 sps:$4 sm:$0xff]  }
  0xdd   :  { %2248 = vmatpush1.bf16.msra.mxu0 %v5927_v19  ;;  %v6017_v19 = vld [vmem:[#allocation6 + $0x800] ss:$48 sps:$4 sm:$0xff]  }
  0xde   :  { %1994 = vmatpush1.bf16.msra.mxu1 %v5852_v5  ;;  %2249 = vmatprep.subr.bf16.mxu0 %v5935_v21  ;;  %v5942_v5 = vld [vmem:[#allocation6 + $0x8a8] ss:$48 sps:$4 sm:$0xff]   ;;  %v6025_v21 = vld [vmem:[#allocation6 + $0x864] ss:$48 sps:$4 sm:$0xff]  }
  0xdf   :  { %1995 = vmatprep.subr.bf16.mxu1 %v5860_v6  ;;  %v5950_v6 = vld [vmem:[#allocation6 + $0x1c] ss:$48 sps:$4 sm:$0xff]  }
  0xe1   :  { %2250 = vmatpush1.bf16.msra.mxu0 %v5933_v24  ;;  %v6023_v24 = vld [vmem:[#allocation6 + $0x860] ss:$48 sps:$4 sm:$0xff]  }
  0xe2   :  { %1996 = vmatpush1.bf16.msra.mxu1 %v5858_v9  ;;  %2251 = vmatprep.subr.bf16.mxu0 %v5941_v25  ;;  %v5948_v9 = vld [vmem:[#allocation6 + $0x18] ss:$48 sps:$4 sm:$0xff]   ;;  %v6031_v25 = vld [vmem:[#allocation6 + $0x8c4] ss:$48 sps:$4 sm:$0xff]  }
  0xe3   :  { %1997 = vmatprep.subr.bf16.mxu1 %v5866_v10  ;;  %v5956_v10 = vld [vmem:[#allocation6 + $0x7c] ss:$48 sps:$4 sm:$0xff]  }
  0xe5   :  { %2252 = vmatpush1.bf16.msra.mxu0 %v5939_v28  ;;  %v6029_v28 = vld [vmem:[#allocation6 + $0x8c0] ss:$48 sps:$4 sm:$0xff]  }
  0xe6   :  { %1998 = vmatpush1.bf16.msra.mxu1 %v5864_v13  ;;  %2253 = vmatprep.subr.bf16.mxu0 %v5947_v29  ;;  %v5954_v13 = vld [vmem:[#allocation6 + $0x78] ss:$48 sps:$4 sm:$0xff]   ;;  %v6040_v29 = vld [vmem:[#allocation9 + $0x4] ss:$12 sps:$4 sm:$0xff]  }
  0xe7   :  { %1999 = vmatprep.subr.bf16.mxu1 %v5872_v14  ;;  %v5962_v14 = vld [vmem:[#allocation6 + $0xdc] ss:$48 sps:$4 sm:$0xff]  }
  0xe9   :  { %2254 = vmatpush1.bf16.msra.mxu0 %v5945_v32  ;;  %v6038_v32 = vld [vmem:[#allocation9] ss:$12 sps:$4 sm:$0xff]  }
  0xea   :  { %2000 = vmatpush1.bf16.msra.mxu1 %v5870_v17  ;;  %2255 = vmatprep.subr.bf16.mxu0 %v5953_v33  ;;  %v5960_v17 = vld [vmem:[#allocation6 + $0xd8] ss:$48 sps:$4 sm:$0xff]  }
  0xeb   :  { %2001 = vmatprep.subr.bf16.mxu1 %v5878_v18  ;;  %v5968_v18 = vld [vmem:[#allocation6 + $0x13c] ss:$48 sps:$4 sm:$0xff]   ;;  %v6046_v33 = vld [vmem:[#allocation9 + $0x1c] ss:$12 sps:$4 sm:$0xff]  }
  0xed   :  { %2256 = vmatpush1.bf16.msra.mxu0 %v5951_v37  ;;  %v6044_v37 = vld [vmem:[#allocation9 + $0x18] ss:$12 sps:$4 sm:$0xff]  }
  0xee   :  { %2002 = vmatpush1.bf16.msra.mxu1 %v5876_v22  ;;  %2257 = vmatprep.subr.bf16.mxu0 %v5959_v38  ;;  %v5966_v22 = vld [vmem:[#allocation6 + $0x138] ss:$48 sps:$4 sm:$0xff]   ;;  %v6052_v38 = vld [vmem:[#allocation9 + $0x34] ss:$12 sps:$4 sm:$0xff]  }
  0xef   :  { %2003 = vmatprep.subr.bf16.mxu1 %v5884_v23  ;;  %v5974_v23 = vld [vmem:[#allocation6 + $0x19c] ss:$48 sps:$4 sm:$0xff]  }
  0xf1   :  { %2258 = vmatpush1.bf16.msra.mxu0 %v5957_v41  ;;  %v6050_v41 = vld [vmem:[#allocation9 + $0x30] ss:$12 sps:$4 sm:$0xff]  }
  0xf2   :  { %2004 = vmatpush1.bf16.msra.mxu1 %v5882_v26  ;;  %2259 = vmatprep.subr.bf16.mxu0 %v5965_v42  ;;  %v5972_v26 = vld [vmem:[#allocation6 + $0x198] ss:$48 sps:$4 sm:$0xff]  }
  0xf3   :  { %2005 = vmatprep.subr.bf16.mxu1 %v5890_v27  ;;  %v5980_v27 = vld [vmem:[#allocation6 + $0x1fc] ss:$48 sps:$4 sm:$0xff]   ;;  %v6058_v42 = vld [vmem:[#allocation9 + $0x4c] ss:$12 sps:$4 sm:$0xff]  }
  0xf5   :  { %2260 = vmatpush1.bf16.msra.mxu0 %v5963_v45  ;;  %v6056_v45 = vld [vmem:[#allocation9 + $0x48] ss:$12 sps:$4 sm:$0xff]  }
  0xf6   :  { %2006 = vmatpush1.bf16.msra.mxu1 %v5888_v30  ;;  %2261 = vmatprep.subr.bf16.mxu0 %v5971_v46  ;;  %v5978_v30 = vld [vmem:[#allocation6 + $0x1f8] ss:$48 sps:$4 sm:$0xff]   ;;  %v6064_v46 = vld [vmem:[#allocation9 + $0x64] ss:$12 sps:$4 sm:$0xff]  }
  0xf7   :  { %2007 = vmatprep.subr.bf16.mxu1 %v5896_v31  ;;  %v5986_v31 = vld [vmem:[#allocation6 + $0x25c] ss:$48 sps:$4 sm:$0xff]  }
  0xf9   :  { %2262 = vmatpush1.bf16.msra.mxu0 %v5969_v49  ;;  %v6062_v49 = vld [vmem:[#allocation9 + $0x60] ss:$12 sps:$4 sm:$0xff]  }
  0xfa   :  { %2008 = vmatpush1.bf16.msra.mxu1 %v5894_v35  ;;  %2263 = vmatprep.subr.bf16.mxu0 %v5977_v50  ;;  %v5984_v35 = vld [vmem:[#allocation6 + $0x258] ss:$48 sps:$4 sm:$0xff]  }
  0xfb   :  { %2020 = vmatprep.subr.bf16.mxu1 %v5902_v36  ;;  %v5992_v36 = vld [vmem:[#allocation6 + $0x2bc] ss:$48 sps:$4 sm:$0xff]   ;;  %v6070_v50 = vld [vmem:[#allocation9 + $0x7c] ss:$12 sps:$4 sm:$0xff]  }
  0xfd   :  { %2010 = vmatmul.mubr.bf16.vlgmr.msra.gmra.mrb[4].mxu1 %v6774_v61  ;;  %2264 = vmatpush1.bf16.msra.mxu0 %v5975_v53  ;;  %v6068_v53 = vld [vmem:[#allocation9 + $0x78] ss:$12 sps:$4 sm:$0xff]  }
  0xfe   :  { %2021 = vmatpush1.bf16.msra.mxu1 %v5900_v39  ;;  %2052 = vmatprep.mubr.bf16.mxu1 %v6670_v3  ;;  %v5990_v39 = vld [vmem:[#allocation6 + $0x2b8] ss:$48 sps:$4 sm:$0xff]  }
  0xff   :  { %2022 = vmatprep.subr.bf16.mxu1 %v5908_v40  ;;  %2265 = vmatprep.subr.bf16.mxu0 %v5983_v54  ;;  %v5998_v40 = vld [vmem:[#allocation6 + $0x31c] ss:$48 sps:$4 sm:$0xff]  }
 0x100   :  { %v6076_v54 = vld [vmem:[#allocation9 + $0x94] ss:$12 sps:$4 sm:$0xff]  }
 0x101   :  { %2266 = vmatpush1.bf16.msra.mxu0 %v5981_v57  ;;  %v6074_v57 = vld [vmem:[#allocation9 + $0x90] ss:$12 sps:$4 sm:$0xff]  }
 0x102   :  { %2023 = vmatpush1.bf16.msra.mxu1 %v5906_v43  ;;  %2278 = vmatprep.subr.bf16.mxu0 %v5989_v58  ;;  %v5996_v43 = vld [vmem:[#allocation6 + $0x318] ss:$48 sps:$4 sm:$0xff]  }
 0x103   :  { %2024 = vmatprep.subr.bf16.mxu1 %v5914_v44  ;;  %v6004_v44 = vld [vmem:[#allocation6 + $0x37c] ss:$48 sps:$4 sm:$0xff]   ;;  %v6082_v58 = vld [vmem:[#allocation9 + $0xac] ss:$12 sps:$4 sm:$0xff]  }
 0x104   :  { %2268 = vmatmul.mubr.bf16.vlgmr.msra.gmra.mrb[4].mxu0 %v6774_v61 }
 0x105   :  { %2279 = vmatpush1.bf16.msra.mxu0 %v5987_v62  ;;  %2310 = vmatprep.mubr.bf16.mxu0 %v6670_v3  ;;  %v6080_v62 = vld [vmem:[#allocation9 + $0xa8] ss:$12 sps:$4 sm:$0xff]  }
 0x106   :  { %2025 = vmatpush1.bf16.msra.mxu1 %v5912_v47  ;;  %2280 = vmatprep.subr.bf16.mxu0 %v5995_v63  ;;  %v6002_v47 = vld [vmem:[#allocation6 + $0x378] ss:$48 sps:$4 sm:$0xff]   ;;  %v6088_v63 = vld [vmem:[#allocation9 + $0xc4] ss:$12 sps:$4 sm:$0xff]  }
 0x107   :  { %2026 = vmatprep.subr.bf16.mxu1 %v5920_v48  ;;  %v6010_v48 = vld [vmem:[#allocation6 + $0x3dc] ss:$48 sps:$4 sm:$0xff]  }
 0x109   :  { %2281 = vmatpush1.bf16.msra.mxu0 %v5993_v2  ;;  %v6086_v2 = vld [vmem:[#allocation9 + $0xc0] ss:$12 sps:$4 sm:$0xff]  }
 0x10a   :  { %2027 = vmatpush1.bf16.msra.mxu1 %v5918_v51  ;;  %2282 = vmatprep.subr.bf16.mxu0 %v6001_v4  ;;  %v6008_v51 = vld [vmem:[#allocation6 + $0x3d8] ss:$48 sps:$4 sm:$0xff]  }
 0x10b   :  { %2028 = vmatprep.subr.bf16.mxu1 %v5926_v52  ;;  %v6016_v52 = vld [vmem:[#allocation6 + $0x43c] ss:$48 sps:$4 sm:$0xff]   ;;  %v6094_v4 = vld [vmem:[#allocation9 + $0xdc] ss:$12 sps:$4 sm:$0xff]  }
 0x10d   :  { %2283 = vmatpush1.bf16.msra.mxu0 %v5999_v7  ;;  %v6092_v7 = vld [vmem:[#allocation9 + $0xd8] ss:$12 sps:$4 sm:$0xff]  }
 0x10e   :  { %2029 = vmatpush1.bf16.msra.mxu1 %v5924_v55  ;;  %2284 = vmatprep.subr.bf16.mxu0 %v6007_v8  ;;  %v6014_v55 = vld [vmem:[#allocation6 + $0x438] ss:$48 sps:$4 sm:$0xff]   ;;  %v6100_v8 = vld [vmem:[#allocation9 + $0xf4] ss:$12 sps:$4 sm:$0xff]  }
 0x10f   :  { %2030 = vmatprep.subr.bf16.mxu1 %v5932_v56  ;;  %v6022_v56 = vld [vmem:[#allocation6 + $0x49c] ss:$48 sps:$4 sm:$0xff]  }
 0x111   :  { %2285 = vmatpush1.bf16.msra.mxu0 %v6005_v11  ;;  %v6098_v11 = vld [vmem:[#allocation9 + $0xf0] ss:$12 sps:$4 sm:$0xff]  }
 0x112   :  { %2031 = vmatpush1.bf16.msra.mxu1 %v5930_v59  ;;  %2286 = vmatprep.subr.bf16.mxu0 %v6013_v12  ;;  %v6020_v59 = vld [vmem:[#allocation6 + $0x498] ss:$48 sps:$4 sm:$0xff]  }
 0x113   :  { %2032 = vmatprep.subr.bf16.mxu1 %v5938_v60  ;;  %v6028_v60 = vld [vmem:[#allocation6 + $0x4fc] ss:$48 sps:$4 sm:$0xff]   ;;  %v6041_v12 = vld [vmem:[#allocation6 + $0x618] ss:$48 sps:$4 sm:$0xff]  }
 0x115   :  { %2287 = vmatpush1.bf16.msra.mxu0 %v6011_v15  ;;  %v6104_v15 = vld [vmem:[#allocation9 + $0x108] ss:$12 sps:$4 sm:$0xff]  }
 0x116   :  { %2033 = vmatpush1.bf16.msra.mxu1 %v5936_v0  ;;  %2288 = vmatprep.subr.bf16.mxu0 %v6019_v16  ;;  %v6026_v0 = vld [vmem:[#allocation6 + $0x4f8] ss:$48 sps:$4 sm:$0xff]   ;;  %v6112_v16 = vld [vmem:[#allocation9 + $0x124] ss:$12 sps:$4 sm:$0xff]  }
 0x117   :  { %2034 = vmatprep.subr.bf16.mxu1 %v5944_v1  ;;  %v6034_v1 = vld [vmem:[#allocation6 + $0x55c] ss:$48 sps:$4 sm:$0xff]  }
 0x119   :  { %2289 = vmatpush1.bf16.msra.mxu0 %v6017_v19  ;;  %v6110_v19 = vld [vmem:[#allocation9 + $0x120] ss:$12 sps:$4 sm:$0xff]  }
 0x11a   :  { %2035 = vmatpush1.bf16.msra.mxu1 %v5942_v5  ;;  %2290 = vmatprep.subr.bf16.mxu0 %v6025_v21  ;;  %v6032_v5 = vld [vmem:[#allocation6 + $0x558] ss:$48 sps:$4 sm:$0xff]  }
 0x11b   :  { %2149 = vmatprep.subr.bf16.mxu1 %v5950_v6  ;;  %v6037_v6 = vld [vmem:[#allocation6 + $0x5bc] ss:$48 sps:$4 sm:$0xff]   ;;  %v6118_v21 = vld [vmem:[#allocation9 + $0x13c] ss:$12 sps:$4 sm:$0xff]  }
 0x11d   :  { %2053 = vmatmul.mubr.bf16.vlgmr.msra.gmra.mrb[4].mxu1 %v6780_v34  ;;  %2291 = vmatpush1.bf16.msra.mxu0 %v6023_v24  ;;  %v6116_v24 = vld [vmem:[#allocation9 + $0x138] ss:$12 sps:$4 sm:$0xff]  }
 0x11e   :  { %2150 = vmatpush1.bf16.msra.mxu1 %v5948_v9  ;;  %2181 = vmatprep.mubr.bf16.mxu1 %v6770_v20  ;;  %v6035_v9 = vld [vmem:[#allocation6 + $0x5b8] ss:$48 sps:$4 sm:$0xff]  }
 0x11f   :  { %2151 = vmatprep.subr.bf16.mxu1 %v5956_v10  ;;  %2292 = vmatprep.subr.bf16.mxu0 %v6031_v25  ;;  %v6043_v10 = vld [vmem:[#allocation6 + $0x61c] ss:$48 sps:$4 sm:$0xff]  }
 0x120   :  { %v6124_v25 = vld [vmem:[#allocation9 + $0x154] ss:$12 sps:$4 sm:$0xff]  }
 0x121   :  { %2293 = vmatpush1.bf16.msra.mxu0 %v6029_v28  ;;  %v6122_v28 = vld [vmem:[#allocation9 + $0x150] ss:$12 sps:$4 sm:$0xff]  }
 0x122   :  { %2152 = vmatpush1.bf16.msra.mxu1 %v5954_v13  ;;  %4380 = vmatprep.subr.bf16.mxu0 %v6040_v29  ;;  %v6106_v13 = vld [vmem:[#allocation9 + $0x10c] ss:$12 sps:$4 sm:$0xff]  }
 0x123   :  { %2153 = vmatprep.subr.bf16.mxu1 %v5962_v14  ;;  %v6049_v14 = vld [vmem:[#allocation6 + $0x67c] ss:$48 sps:$4 sm:$0xff]   ;;  %v6130_v29 = vld [vmem:[#allocation9 + $0x16c] ss:$12 sps:$4 sm:$0xff]  }
 0x124   :  { %2311 = vmatmul.mubr.bf16.vlgmr.msra.gmra.mrb[4].mxu0 %v6780_v34 }
 0x125   :  { %4381 = vmatpush1.bf16.msra.mxu0 %v6038_v32  ;;  %v6128_v32 = vld [vmem:[#allocation9 + $0x168] ss:$12 sps:$4 sm:$0xff]  }
 0x126   :  { %2154 = vmatpush1.bf16.msra.mxu1 %v5960_v17  ;;  %4382 = vmatprep.subr.bf16.mxu0 %v6046_v33  ;;  %v6047_v17 = vld [vmem:[#allocation6 + $0x678] ss:$48 sps:$4 sm:$0xff]   ;;  %v6160_v33 = vld [vmem:[#allocation9 + $0x184] ss:$12 sps:$4 sm:$0xff]  }
 0x127   :  { %2155 = vmatprep.subr.bf16.mxu1 %v5968_v18  ;;  %v6055_v18 = vld [vmem:[#allocation6 + $0x6dc] ss:$48 sps:$4 sm:$0xff]  }
 0x129   :  { %4383 = vmatpush1.bf16.msra.mxu0 %v6044_v37  ;;  %v6077_v37 = vld [vmem:[#allocation6 + $0x858] ss:$48 sps:$4 sm:$0xff]  }
 0x12a   :  { %2156 = vmatpush1.bf16.msra.mxu1 %v5966_v22  ;;  %4384 = vmatprep.subr.bf16.mxu0 %v6052_v38  ;;  %v6053_v22 = vld [vmem:[#allocation6 + $0x6d8] ss:$48 sps:$4 sm:$0xff]   ;;  %v6085_v38 = vld [vmem:[#allocation6 + $0x8bc] ss:$48 sps:$4 sm:$0xff]  }
 0x12b   :  { %2157 = vmatprep.subr.bf16.mxu1 %v5974_v23  ;;  %v6061_v23 = vld [vmem:[#allocation6 + $0x73c] ss:$48 sps:$4 sm:$0xff]  }
 0x12d   :  { %4385 = vmatpush1.bf16.msra.mxu0 %v6050_v41  ;;  %v6089_v41 = vld [vmem:[#allocation6 + $0x28] ss:$48 sps:$4 sm:$0xff]  }
 0x12e   :  { %2158 = vmatpush1.bf16.msra.mxu1 %v5972_v26  ;;  %4386 = vmatprep.subr.bf16.mxu0 %v6058_v42  ;;  %v6059_v26 = vld [vmem:[#allocation6 + $0x738] ss:$48 sps:$4 sm:$0xff]   ;;  %v6097_v42 = vld [vmem:[#allocation6 + $0x8c] ss:$48 sps:$4 sm:$0xff]  }
 0x12f   :  { %2159 = vmatprep.subr.bf16.mxu1 %v5980_v27  ;;  %v6067_v27 = vld [vmem:[#allocation6 + $0x79c] ss:$48 sps:$4 sm:$0xff]  }
 0x131   :  { %4387 = vmatpush1.bf16.msra.mxu0 %v6056_v45  ;;  %v6101_v45 = vld [vmem:[#allocation6 + $0xe8] ss:$48 sps:$4 sm:$0xff]  }
 0x132   :  { %2160 = vmatpush1.bf16.msra.mxu1 %v5978_v30  ;;  %4388 = vmatprep.subr.bf16.mxu0 %v6064_v46  ;;  %v6065_v30 = vld [vmem:[#allocation6 + $0x798] ss:$48 sps:$4 sm:$0xff]   ;;  %v391_v46 = vlaneseq }
 0x133   :  { %2161 = vmatprep.subr.bf16.mxu1 %v5986_v31  ;;  %v6073_v31 = vld [vmem:[#allocation6 + $0x7fc] ss:$48 sps:$4 sm:$0xff]  }
 0x135   :  { %4389 = vmatpush1.bf16.msra.mxu0 %v6062_v49  ;;  %v6797_v49 = vshrl.u32 %v391_v46, 7  ;;  %v6146_v46 = vld [vmem:[#allocation6 + $0x4a8] ss:$48 sps:$4 sm:$0xff]  }
 0x136   :  { %2162 = vmatpush1.bf16.msra.mxu1 %v5984_v35  ;;  %4390 = vmatprep.subr.bf16.mxu0 %v6070_v50  ;;  %v6071_v35 = vld [vmem:[#allocation6 + $0x7f8] ss:$48 sps:$4 sm:$0xff]   ;;  %v6115_v50 = vld [vmem:[#allocation6 + $0x1ac] ss:$48 sps:$4 sm:$0xff]  }
 0x137   :  { %2163 = vmatprep.subr.bf16.mxu1 %v5992_v36  ;;  %v6079_v36 = vld [vmem:[#allocation6 + $0x85c] ss:$48 sps:$4 sm:$0xff]  }
 0x139   :  { %4391 = vmatpush1.bf16.msra.mxu0 %v6068_v53  ;;  %v6802_v53 = vsub.s32 0, %v6797_v49 }
 0x13a   :  { %2164 = vmatpush1.bf16.msra.mxu1 %v5990_v39  ;;  %4392 = vmatprep.subr.bf16.mxu0 %v6076_v54  ;;  %v6083_v39 = vld [vmem:[#allocation6 + $0x8b8] ss:$48 sps:$4 sm:$0xff]   ;;  %v6121_v54 = vld [vmem:[#allocation6 + $0x20c] ss:$48 sps:$4 sm:$0xff]  }
 0x13b   :  { %2165 = vmatprep.subr.bf16.mxu1 %v5998_v40  ;;  %v6091_v40 = vld [vmem:[#allocation6 + $0x2c] ss:$48 sps:$4 sm:$0xff]  }
 0x13d   :  { %4393 = vmatpush1.bf16.msra.mxu0 %v6074_v57  ;;  %v6127_v57 = vld [vmem:[#allocation6 + $0x26c] ss:$48 sps:$4 sm:$0xff]  }
 0x13e   :  { %2166 = vmatpush1.bf16.msra.mxu1 %v5996_v43  ;;  %4394 = vmatprep.subr.bf16.mxu0 %v6082_v58  ;;  %v6095_v43 = vld [vmem:[#allocation6 + $0x88] ss:$48 sps:$4 sm:$0xff]  }
 0x13f   :  { %2167 = vmatprep.subr.bf16.mxu1 %v6004_v44  ;;  %v6103_v44 = vld [vmem:[#allocation6 + $0xec] ss:$48 sps:$4 sm:$0xff]  }
 0x141   :  { %4395 = vmatpush1.bf16.msra.mxu0 %v6080_v62 }
 0x142   :  { %2168 = vmatpush1.bf16.msra.mxu1 %v6002_v47  ;;  %4396 = vmatprep.subr.bf16.mxu0 %v6088_v63  ;;  %v6109_v47 = vld [vmem:[#allocation6 + $0x14c] ss:$48 sps:$4 sm:$0xff]   ;;  %v6125_v63 = vld [vmem:[#allocation6 + $0x268] ss:$48 sps:$4 sm:$0xff]  }
 0x143   :  { %2169 = vmatprep.subr.bf16.mxu1 %v6010_v48  ;;  %v6107_v48 = vld [vmem:[#allocation6 + $0x148] ss:$48 sps:$4 sm:$0xff]  }
 0x145   :  { %4397 = vmatpush1.bf16.msra.mxu0 %v6086_v2 }
 0x146   :  { %2170 = vmatpush1.bf16.msra.mxu1 %v6008_v51  ;;  %4398 = vmatprep.subr.bf16.mxu0 %v6094_v4  ;;  %v6113_v51 = vld [vmem:[#allocation6 + $0x1a8] ss:$48 sps:$4 sm:$0xff]  }
 0x147   :  { %2171 = vmatprep.subr.bf16.mxu1 %v6016_v52  ;;  %v6799_v52 = vld [vmem:[#allocation8] sm:$0xff] }
 0x149   :  { %4399 = vmatpush1.bf16.msra.mxu0 %v6092_v7  ;;  %v6131_v7 = vld [vmem:[#allocation6 + $0x2c8] ss:$48 sps:$4 sm:$0xff]  }
 0x14a   :  { %2172 = vmatpush1.bf16.msra.mxu1 %v6014_v55  ;;  %4400 = vmatprep.subr.bf16.mxu0 %v6100_v8  ;;  %v6119_v55 = vld [vmem:[#allocation6 + $0x208] ss:$48 sps:$4 sm:$0xff]  }
 0x14b   :  { %2173 = vmatprep.subr.bf16.mxu1 %v6022_v56  ;;  %v394_v56 = vrot.slane %v6799_v52, %v6802_v53 }
 0x14d   :  { %4401 = vmatpush1.bf16.msra.mxu0 %v6098_v11  ;;  %v6136_v11 = vld [vmem:[#allocation6 + $0x32c] ss:$48 sps:$4 sm:$0xff]  }
 0x14e   :  { %2174 = vmatpush1.bf16.msra.mxu1 %v6020_v59  ;;  %4402 = vmatprep.subr.bf16.mxu0 %v6106_v13 }
 0x14f   :  { %2175 = vmatprep.subr.bf16.mxu1 %v6028_v60 }
 0x151   :  { %4403 = vmatpush1.bf16.msra.mxu0 %v6104_v15  ;;  %v6134_v15 = vld [vmem:[#allocation6 + $0x328] ss:$48 sps:$4 sm:$0xff]  }
 0x152   :  { %2176 = vmatpush1.bf16.msra.mxu1 %v6026_v0  ;;  %4404 = vmatprep.subr.bf16.mxu0 %v6112_v16  ;;  %v6133_v0 = vld [vmem:[#allocation6 + $0x2cc] ss:$48 sps:$4 sm:$0xff]  }
 0x153   :  { %2177 = vmatprep.subr.bf16.mxu1 %v6034_v1  ;;  %v6158_v16 = vld [vmem:[#allocation9 + $0x180] ss:$12 sps:$4 sm:$0xff]  }
 0x155   :  { %4405 = vmatpush1.bf16.msra.mxu0 %v6110_v19  ;;  %v6164_v19 = vld [vmem:[#allocation9 + $0x198] ss:$12 sps:$4 sm:$0xff]  }
 0x156   :  { %2178 = vmatpush1.bf16.msra.mxu1 %v6032_v5  ;;  %4406 = vmatprep.subr.bf16.mxu0 %v6118_v21  ;;  %v6137_v21 = vld [vmem:[#allocation6 + $0x388] ss:$48 sps:$4 sm:$0xff]  }
 0x157   :  { %2179 = vmatprep.subr.bf16.mxu1 %v6037_v6 }
 0x159   :  { %4407 = vmatpush1.bf16.msra.mxu0 %v6116_v24  ;;  %v409_v24 = vsub.s32 4, %v6797_v49 }
 0x15a   :  { %2180 = vmatpush1.bf16.msra.mxu1 %v6035_v9  ;;  %4408 = vmatprep.subr.bf16.mxu0 %v6124_v25  ;;  %v413_v25 = vsub.s32 5, %v6797_v49 }
 0x15b   :  { %2192 = vmatprep.subr.bf16.mxu1 %v6043_v10 }
 0x15d   :  { %2182 = vmatmul.mubr.bf16.vlgmr.msra.gmra.mrb[8].mxu1 %v6774_v61  ;;  %4409 = vmatpush1.bf16.msra.mxu0 %v6122_v28  ;;  %v6145_v28 = vld [vmem:[#allocation6 + $0x44c] ss:$48 sps:$4 sm:$0xff]  }
 0x15e   :  { %2193 = vmatpush1.bf16.msra.mxu1 %v6041_v12  ;;  %2224 = vmatprep.mubr.bf16.mxu1 %v6670_v3 }
 0x15f   :  { %2194 = vmatprep.subr.bf16.mxu1 %v6049_v14  ;;  %4410 = vmatprep.subr.bf16.mxu0 %v6130_v29  ;;  %v6178_v29 = vld [vmem:[#allocation9 + $0x1cc] ss:$12 sps:$4 sm:$0xff]  }
 0x161   :  { %4411 = vmatpush1.bf16.msra.mxu0 %v6128_v32  ;;  %v6143_v32 = vld [vmem:[#allocation6 + $0x448] ss:$48 sps:$4 sm:$0xff]  }
 0x162   :  { %2195 = vmatpush1.bf16.msra.mxu1 %v6047_v17  ;;  %4423 = vmatprep.subr.bf16.mxu0 %v6160_v33  ;;  %v6139_v17 = vld [vmem:[#allocation6 + $0x38c] ss:$48 sps:$4 sm:$0xff]   ;;  %v6176_v33 = vld [vmem:[#allocation9 + $0x1c8] ss:$12 sps:$4 sm:$0xff]  }
 0x163   :  { %2196 = vmatprep.subr.bf16.mxu1 %v6055_v18  ;;  %v6166_v18 = vld [vmem:[#allocation9 + $0x19c] ss:$12 sps:$4 sm:$0xff]  }
 0x166   :  { %2197 = vmatpush1.bf16.msra.mxu1 %v6053_v22  ;;  %v6142_v22 = vld [vmem:[#allocation6 + $0x3ec] ss:$48 sps:$4 sm:$0xff]  }
 0x167   :  { %2198 = vmatprep.subr.bf16.mxu1 %v6061_v23  ;;  %v6172_v23 = vld [vmem:[#allocation9 + $0x1b4] ss:$12 sps:$4 sm:$0xff]  }
 0x16a   :  { %2199 = vmatpush1.bf16.msra.mxu1 %v6059_v26  ;;  %v6140_v26 = vld [vmem:[#allocation6 + $0x3e8] ss:$48 sps:$4 sm:$0xff]  }
 0x16b   :  { %2200 = vmatprep.subr.bf16.mxu1 %v6067_v27  ;;  %v6170_v27 = vld [vmem:[#allocation9 + $0x1b0] ss:$12 sps:$4 sm:$0xff]  }
 0x16e   :  { %2201 = vmatpush1.bf16.msra.mxu1 %v6065_v30  ;;  %v410_v30 = vrot.slane %v6799_v52, %v409_v24  ;;  %v6220_v24 = vld [vmem:[#allocation9 + $0x288] ss:$12 sps:$4 sm:$0xff]  }
 0x16f   :  { %2202 = vmatprep.subr.bf16.mxu1 %v6073_v31  ;;  %v414_v31 = vrot.slane %v6799_v52, %v413_v25  ;;  %v6227_v25 = vld [vmem:[#allocation9 + $0x2a4] ss:$12 sps:$4 sm:$0xff]  }
 0x172   :  { %2203 = vmatpush1.bf16.msra.mxu1 %v6071_v35  ;;  %v6148_v35 = vld [vmem:[#allocation6 + $0x4ac] ss:$48 sps:$4 sm:$0xff]  }
 0x173   :  { %2204 = vmatprep.subr.bf16.mxu1 %v6079_v36  ;;  %v6184_v36 = vld [vmem:[#allocation9 + $0x1e4] ss:$12 sps:$4 sm:$0xff]  }
 0x176   :  { %2205 = vmatpush1.bf16.msra.mxu1 %v6077_v37 }
 0x177   :  { %2206 = vmatprep.subr.bf16.mxu1 %v6085_v38 }
 0x17a   :  { %2207 = vmatpush1.bf16.msra.mxu1 %v6083_v39 }
 0x17b   :  { %2321 = vmatprep.subr.bf16.mxu1 %v6091_v40 }
 0x17d   :  { %2225 = vmatmul.mubr.bf16.vlgmr.msra.gmra.mrb[8].mxu1 %v6780_v34 }
 0x17e   :  { %2322 = vmatpush1.bf16.msra.mxu1 %v6089_v41  ;;  %2353 = vmatprep.mubr.bf16.mxu1 %v6770_v20  ;;  %v6805_v20 = vsub.s32 1, %v6797_v49 }
 0x17f   :  { %2323 = vmatprep.subr.bf16.mxu1 %v6097_v42  ;;  %v6182_v42 = vld [vmem:[#allocation9 + $0x1e0] ss:$12 sps:$4 sm:$0xff]  }
 0x180   :  { %v398_v58 = vrot.slane %v6799_v52, %v6805_v20 }
 0x182   :  { %2324 = vmatpush1.bf16.msra.mxu1 %v6095_v43 }
 0x183   :  { %2325 = vmatprep.subr.bf16.mxu1 %v6103_v44 }
 0x186   :  { %2326 = vmatpush1.bf16.msra.mxu1 %v6101_v45 }
 0x187   :  { %2327 = vmatprep.subr.bf16.mxu1 %v6109_v47 }
 0x18a   :  { %2328 = vmatpush1.bf16.msra.mxu1 %v6107_v48 }
 0x18b   :  { %2329 = vmatprep.subr.bf16.mxu1 %v6115_v50  ;;  %v6190_v50 = vld [vmem:[#allocation9 + $0x1fc] ss:$12 sps:$4 sm:$0xff]  }
 0x18e   :  { %2330 = vmatpush1.bf16.msra.mxu1 %v6113_v51  ;;  %v6151_v51 = vld [vmem:[#allocation6 + $0x50c] ss:$48 sps:$4 sm:$0xff]  }
 0x18f   :  { %2331 = vmatprep.subr.bf16.mxu1 %v6121_v54 }
 0x190   :  { %v1968_v59 = vpop.f32.mrb[0].mxu1 }
 0x191   :  { %v5617_v60 = vadd.f32 %v1968_v59, %v394_v56  ;;  %v1970_v62 = vpop.f32.mrb[1].mxu1  ;;  %v6154_v59 = vld [vmem:[#allocation6 + $0x56c] ss:$48 sps:$4 sm:$0xff]  }
 0x192   :  { %v5618_v1 = vadd.f32 %v1970_v62, %v398_v58  ;;  %v1972_v2 = vpop.f32.mrb[2].mxu1  ;;  %2332 = vmatpush1.bf16.msra.mxu1 %v6119_v55  ;;  %v6196_v62 = vld [vmem:[#allocation9 + $0x214] ss:$12 sps:$4 sm:$0xff]  }
 0x193   :  { %v5619_v4 = vadd.f32 %v1972_v2, %v394_v56  ;;  %v1974_v5 = vpop.f32.mrb[3].mxu1  ;;  %2333 = vmatprep.subr.bf16.mxu1 %v6127_v57  ;;  %v2407_v8 = vmax.f32 %v5617_v60, 0.0  ;;  %v6149_v56 = vld [vmem:[#allocation6 + $0x508] ss:$48 sps:$4 sm:$0xff]  }
 0x194   :  { %v5620_v6 = vadd.f32 %v1974_v5, %v398_v58  ;;  %v2408_v9 = vmax.f32 %v5618_v1, 0.0  ;;  %v6188_v58 = vld [vmem:[#allocation9 + $0x1f8] ss:$12 sps:$4 sm:$0xff]   ;;  %v6157_v1 = vld [vmem:[#allocation6 + $0x5cc] ss:$48 sps:$4 sm:$0xff]  }
 0x195   :  { %v2419_v10 = vmax.f32 %v5619_v4, 0.0  ;;  %v6202_v2 = vld [vmem:[#allocation9 + $0x22c] ss:$12 sps:$4 sm:$0xff]   ;;  %v6200_v5 = vld [vmem:[#allocation9 + $0x228] ss:$12 sps:$4 sm:$0xff]  }
 0x196   :  { %v2420_v12 = vmax.f32 %v5620_v6, 0.0  ;;  %2334 = vmatpush1.bf16.msra.mxu1 %v6125_v63  ;;  %v6152_v63 = vld [vmem:[#allocation6 + $0x568] ss:$48 sps:$4 sm:$0xff]   ;;  %v6163_v6 = vld [vmem:[#allocation6 + $0x62c] ss:$48 sps:$4 sm:$0xff]  }
 0x197   :  { %v6811_v13 = vpack.c.bf16 %v2419_v10, %v2407_v8  ;;  %2335 = vmatprep.subr.bf16.mxu1 %v6133_v0  ;;  %v2140_v37 = vpop.f32.mrb[0].mxu0  ;;  %v6194_v0 = vld [vmem:[#allocation9 + $0x210] ss:$12 sps:$4 sm:$0xff]   ;;  %v6206_v8 = vld [vmem:[#allocation9 + $0x240] ss:$12 sps:$4 sm:$0xff]  }
 0x198   :  { %v6813_v14 = vpack.c.bf16 %v2420_v12, %v2408_v9  ;;  %v5625_v38 = vadd.f32 %v2140_v37, %v410_v30  ;;  %v2142_v39 = vpop.f32.mrb[1].mxu0  ;;  %v6155_v4 = vld [vmem:[#allocation6 + $0x5c8] ss:$48 sps:$4 sm:$0xff]   ;;  %v6210_v12 = vld [vmem:[#allocation9 + $0x258] ss:$12 sps:$4 sm:$0xff]  }
 0x199   :  { %v5626_v40 = vadd.f32 %v2142_v39, %v414_v31  ;;  %v2144_v41 = vpop.f32.mrb[2].mxu0  ;;  %v6161_v9 = vld [vmem:[#allocation6 + $0x628] ss:$48 sps:$4 sm:$0xff]   ;;  %v6205_v37 = vld [vmem:[#allocation6 + $0x8cc] ss:$48 sps:$4 sm:$0xff]  }
 0x19a   :  { %2336 = vmatpush1.bf16.msra.mxu1 %v6131_v7  ;;  %4412 = vmatprep.mubr.bf16.mxu0 %v6813_v14  ;;  %v2411_v43 = vmax.f32 %v5625_v38, 0.0  ;;  %v5627_v44 = vadd.f32 %v2144_v41, %v410_v30  ;;  %v2146_v45 = vpop.f32.mrb[3].mxu0  ;;  %v6208_v7 = vld [vmem:[#allocation9 + $0x244] ss:$12 sps:$4 sm:$0xff]   ;;  %v6212_v10 = vld [vmem:[#allocation9 + $0x25c] ss:$12 sps:$4 sm:$0xff]  }
 0x19b   :  { %4413 = vmatmul.mubr.bf16.vlgmr.msra.gmra.mrb[8].mxu0 %v6811_v13  ;;  %2337 = vmatprep.subr.bf16.mxu1 %v6136_v11  ;;  %v2412_v47 = vmax.f32 %v5626_v40, 0.0  ;;  %v5628_v48 = vadd.f32 %v2146_v45, %v414_v31  ;;  %v6169_v11 = vld [vmem:[#allocation6 + $0x68c] ss:$48 sps:$4 sm:$0xff]   ;;  %v6230_v30 = vld [vmem:[#allocation9 + $0x2b8] ss:$12 sps:$4 sm:$0xff]  }
 0x19c   :  { %4424 = vmatpush1.bf16.msra.mxu0 %v6158_v16  ;;  %v2423_v54 = vmax.f32 %v5627_v44, 0.0  ;;  %v6175_v16 = vld [vmem:[#allocation6 + $0x6ec] ss:$48 sps:$4 sm:$0xff]   ;;  %v6240_v38 = vld [vmem:[#allocation9 + $0x2e8] ss:$12 sps:$4 sm:$0xff]  }
 0x19d   :  { %4425 = vmatprep.subr.bf16.mxu0 %v6166_v18  ;;  %v2424_v55 = vmax.f32 %v5628_v48, 0.0  ;;  %v6173_v18 = vld [vmem:[#allocation6 + $0x6e8] ss:$48 sps:$4 sm:$0xff]   ;;  %v6199_v31 = vld [vmem:[#allocation6 + $0x86c] ss:$48 sps:$4 sm:$0xff]  }
 0x19e   :  { %2338 = vmatpush1.bf16.msra.mxu1 %v6134_v15  ;;  %v6821_v57 = vpack.c.bf16 %v2423_v54, %v2411_v43  ;;  %v6167_v15 = vld [vmem:[#allocation6 + $0x688] ss:$48 sps:$4 sm:$0xff]   ;;  %v6247_v40 = vld [vmem:[#allocation9 + $0x304] ss:$12 sps:$4 sm:$0xff]   ;;  %v6209_v41 = vld [vmem:[#allocation9 + $0xc8] ss:$12 sps:$4 sm:$0xff]  }
 0x19f   :  { %2339 = vmatprep.subr.bf16.mxu1 %v6139_v17  ;;  %v6823_v60 = vpack.c.bf16 %v2424_v55, %v2412_v47  ;;  %v6217_v17 = vld [vmem:[#allocation9 + $0x274] ss:$12 sps:$4 sm:$0xff]   ;;  %v6203_v39 = vld [vmem:[#allocation6 + $0x8c8] ss:$48 sps:$4 sm:$0xff]   ;;  %v6219_v45 = vld [vmem:[#allocation9 + $0xf8] ss:$12 sps:$4 sm:$0xff]  }
 0x1a0   :  { %4426 = vmatpush1.bf16.msra.mxu0 %v6164_v19  ;;  %v6215_v19 = vld [vmem:[#allocation9 + $0x270] ss:$12 sps:$4 sm:$0xff]   ;;  %v6214_v43 = vld [vmem:[#allocation9 + $0xe0] ss:$12 sps:$4 sm:$0xff]   ;;  %v6233_v54 = vld [vmem:[#allocation9 + $0x68] ss:$12 sps:$4 sm:$0xff]  }
 0x1a1   :  { %4427 = vmatprep.subr.bf16.mxu0 %v6172_v23  ;;  %v6179_v23 = vld [vmem:[#allocation6 + $0x748] ss:$48 sps:$4 sm:$0xff]  }
 0x1a2   :  { %2340 = vmatpush1.bf16.msra.mxu1 %v6137_v21  ;;  %v6181_v21 = vld [vmem:[#allocation6 + $0x74c] ss:$48 sps:$4 sm:$0xff]  }
 0x1a3   :  { %2341 = vmatprep.subr.bf16.mxu1 %v6142_v22  ;;  %v6222_v22 = vld [vmem:[#allocation9 + $0x28c] ss:$12 sps:$4 sm:$0xff]   ;;  %v6224_v47 = vld [vmem:[#allocation9 + $0x110] ss:$12 sps:$4 sm:$0xff]  }
 0x1a4   :  { %4428 = vmatpush1.bf16.msra.mxu0 %v6170_v27  ;;  %v6193_v27 = vld [vmem:[#allocation6 + $0x80c] ss:$48 sps:$4 sm:$0xff]  }
 0x1a5   :  { %4429 = vmatprep.subr.bf16.mxu0 %v6178_v29  ;;  %v6191_v29 = vld [vmem:[#allocation6 + $0x808] ss:$48 sps:$4 sm:$0xff]  }
 0x1a6   :  { %2342 = vmatpush1.bf16.msra.mxu1 %v6140_v26  ;;  %v6185_v26 = vld [vmem:[#allocation6 + $0x7a8] ss:$48 sps:$4 sm:$0xff]  }
 0x1a7   :  { %2343 = vmatprep.subr.bf16.mxu1 %v6145_v28  ;;  %v6232_v28 = vld [vmem:[#allocation9 + $0x2bc] ss:$12 sps:$4 sm:$0xff]   ;;  %v6218_v44 = vld [vmem:[#allocation9 + $0x20] ss:$12 sps:$4 sm:$0xff]  }
 0x1a8   :  { %4430 = vmatpush1.bf16.msra.mxu0 %v6176_v33  ;;  %v6235_v33 = vld [vmem:[#allocation9 + $0x2d0] ss:$12 sps:$4 sm:$0xff]  }
 0x1a9   :  { %4431 = vmatprep.subr.bf16.mxu0 %v6184_v36  ;;  %v6242_v36 = vld [vmem:[#allocation9 + $0x2ec] ss:$12 sps:$4 sm:$0xff]   ;;  %v6228_v48 = vld [vmem:[#allocation9 + $0x50] ss:$12 sps:$4 sm:$0xff]  }
 0x1aa   :  { %2344 = vmatpush1.bf16.msra.mxu1 %v6143_v32  ;;  %v6237_v32 = vld [vmem:[#allocation9 + $0x2d4] ss:$12 sps:$4 sm:$0xff]  }
 0x1ab   :  { %2345 = vmatprep.subr.bf16.mxu1 %v6148_v35  ;;  %v6197_v35 = vld [vmem:[#allocation6 + $0x868] ss:$48 sps:$4 sm:$0xff]  }
 0x1ac   :  { %4432 = vmatpush1.bf16.msra.mxu0 %v6182_v42  ;;  %v6213_v42 = vld [vmem:[#allocation9 + $0x8] ss:$12 sps:$4 sm:$0xff]  }
 0x1ad   :  { %4433 = vmatprep.subr.bf16.mxu0 %v6190_v50  ;;  %v6229_v50 = vld [vmem:[#allocation9 + $0x128] ss:$12 sps:$4 sm:$0xff]  }
 0x1ae   :  { %2346 = vmatpush1.bf16.msra.mxu1 %v6146_v46  ;;  %v6223_v46 = vld [vmem:[#allocation9 + $0x38] ss:$12 sps:$4 sm:$0xff]  }
 0x1af   :  { %2347 = vmatprep.subr.bf16.mxu1 %v6151_v51  ;;  %v6830_v51 = vsub.s32 2, %v6797_v49 }
 0x1b0   :  { %4434 = vmatpush1.bf16.msra.mxu0 %v6188_v58  ;;  %v6238_v58 = vld [vmem:[#allocation9 + $0x80] ss:$12 sps:$4 sm:$0xff]  }
 0x1b1   :  { %4435 = vmatprep.subr.bf16.mxu0 %v6196_v62  ;;  %v402_v55 = vrot.slane %v6799_v52, %v6830_v51 }
 0x1b2   :  { %2348 = vmatpush1.bf16.msra.mxu1 %v6149_v56 }
 0x1b3   :  { %2349 = vmatprep.subr.bf16.mxu1 %v6154_v59  ;;  %v6239_v59 = vld [vmem:[#allocation9 + $0x158] ss:$12 sps:$4 sm:$0xff]  }
 0x1b4   :  { %4436 = vmatpush1.bf16.msra.mxu0 %v6194_v0 }
 0x1b5   :  { %4437 = vmatprep.subr.bf16.mxu0 %v6202_v2 }
 0x1b6   :  { %2350 = vmatpush1.bf16.msra.mxu1 %v6152_v63 }
 0x1b7   :  { %2351 = vmatprep.subr.bf16.mxu1 %v6157_v1 }
 0x1b8   :  { %4438 = vmatpush1.bf16.msra.mxu0 %v6200_v5 }
 0x1b9   :  { %4439 = vmatprep.subr.bf16.mxu0 %v6208_v7  ;;  %v6244_v7 = vld [vmem:[#allocation9 + $0x170] ss:$12 sps:$4 sm:$0xff]  }
 0x1ba   :  { %2352 = vmatpush1.bf16.msra.mxu1 %v6155_v4  ;;  %v6243_v4 = vld [vmem:[#allocation9 + $0x98] ss:$12 sps:$4 sm:$0xff]  }
 0x1bb   :  { %2364 = vmatprep.subr.bf16.mxu1 %v6163_v6 }
 0x1bc   :  { %4440 = vmatpush1.bf16.msra.mxu0 %v6206_v8 }
 0x1bd   :  { %2354 = vmatmul.mubr.bf16.vlgmr.msra.gmra.mrb[12].mxu1 %v6774_v61  ;;  %4441 = vmatprep.subr.bf16.mxu0 %v6212_v10  ;;  %v6187_v61 = vld [vmem:[#allocation6 + $0x7ac] ss:$48 sps:$4 sm:$0xff]  }
 0x1be   :  { %2365 = vmatpush1.bf16.msra.mxu1 %v6161_v9  ;;  %2396 = vmatprep.mubr.bf16.mxu1 %v6670_v3  ;;  %v6225_v3 = vld [vmem:[#allocation9 + $0x2a0] ss:$12 sps:$4 sm:$0xff]  }
 0x1bf   :  { %2366 = vmatprep.subr.bf16.mxu1 %v6169_v11 }
 0x1c0   :  { %4442 = vmatpush1.bf16.msra.mxu0 %v6210_v12 }
 0x1c1   :  { %4443 = vmatprep.subr.bf16.mxu0 %v6217_v17 }
 0x1c2   :  { %2367 = vmatpush1.bf16.msra.mxu1 %v6167_v15 }
 0x1c3   :  { %2368 = vmatprep.subr.bf16.mxu1 %v6175_v16  ;;  %v6249_v16 = vld [vmem:[#allocation9 + $0x248] ss:$12 sps:$4 sm:$0xff]  }
 0x1c4   :  { %4444 = vmatpush1.bf16.msra.mxu0 %v6215_v19  ;;  %v6252_v19 = vld [vmem:[#allocation9 + $0x31c] ss:$12 sps:$4 sm:$0xff]  }
 0x1c5   :  { %4445 = vmatprep.subr.bf16.mxu0 %v6222_v22  ;;  %v6254_v22 = vld [vmem:[#allocation9 + $0x260] ss:$12 sps:$4 sm:$0xff]  }
 0x1c6   :  { %2369 = vmatpush1.bf16.msra.mxu1 %v6173_v18  ;;  %v6245_v18 = vld [vmem:[#allocation9 + $0x300] ss:$12 sps:$4 sm:$0xff]  }
 0x1c7   :  { %2370 = vmatprep.subr.bf16.mxu1 %v6181_v21  ;;  %v6253_v21 = vld [vmem:[#allocation9 + $0x188] ss:$12 sps:$4 sm:$0xff]  }
 0x1c8   :  { %4446 = vmatpush1.bf16.msra.mxu0 %v6220_v24  ;;  %v6257_v24 = vld [vmem:[#allocation9 + $0x334] ss:$12 sps:$4 sm:$0xff]  }
 0x1c9   :  { %4447 = vmatprep.subr.bf16.mxu0 %v6227_v25  ;;  %v6259_v25 = vld [vmem:[#allocation9 + $0x278] ss:$12 sps:$4 sm:$0xff]  }
 0x1ca   :  { %2371 = vmatpush1.bf16.msra.mxu1 %v6179_v23  ;;  %v6250_v23 = vld [vmem:[#allocation9 + $0x318] ss:$12 sps:$4 sm:$0xff]  }
 0x1cb   :  { %2372 = vmatprep.subr.bf16.mxu1 %v6187_v61  ;;  %v6258_v61 = vld [vmem:[#allocation9 + $0x1a0] ss:$12 sps:$4 sm:$0xff]  }
 0x1cc   :  { %4448 = vmatpush1.bf16.msra.mxu0 %v6225_v3  ;;  %v6255_v3 = vld [vmem:[#allocation9 + $0x330] ss:$12 sps:$4 sm:$0xff]  }
 0x1cd   :  { %4449 = vmatprep.subr.bf16.mxu0 %v6232_v28  ;;  %v6263_v28 = vld [vmem:[#allocation9 + $0x1b8] ss:$12 sps:$4 sm:$0xff]  }
 0x1ce   :  { %2373 = vmatpush1.bf16.msra.mxu1 %v6185_v26  ;;  %v6843_v26 = vld [vmem:[#allocation8 + $0x8] sm:$0xf] }
 0x1cf   :  { %2374 = vmatprep.subr.bf16.mxu1 %v6193_v27  ;;  %v6262_v27 = vld [vmem:[#allocation9 + $0x34c] ss:$12 sps:$4 sm:$0xff]  }
 0x1d0   :  { %4450 = vmatpush1.bf16.msra.mxu0 %v6230_v30  ;;  %v430_v30 = vrot.slane %v6843_v26, %v6805_v20 }
 0x1d1   :  { %4451 = vmatprep.subr.bf16.mxu0 %v6237_v32  ;;  %v6267_v32 = vld [vmem:[#allocation9 + $0x364] ss:$12 sps:$4 sm:$0xff]  }
 0x1d2   :  { %2375 = vmatpush1.bf16.msra.mxu1 %v6191_v29  ;;  %v426_v29 = vrot.slane %v6843_v26, %v6802_v53 }
 0x1d3   :  { %2376 = vmatprep.subr.bf16.mxu1 %v6199_v31  ;;  %v6260_v31 = vld [vmem:[#allocation9 + $0x348] ss:$12 sps:$4 sm:$0xff]  }
 0x1d4   :  { %4452 = vmatpush1.bf16.msra.mxu0 %v6235_v33 }
 0x1d5   :  { %4453 = vmatprep.subr.bf16.mxu0 %v6242_v36 }
 0x1d6   :  { %2377 = vmatpush1.bf16.msra.mxu1 %v6197_v35  ;;  %v6268_v35 = vld [vmem:[#allocation9 + $0x1d0] ss:$12 sps:$4 sm:$0xff]  }
 0x1d7   :  { %2378 = vmatprep.subr.bf16.mxu1 %v6205_v37 }
 0x1d8   :  { %4454 = vmatpush1.bf16.msra.mxu0 %v6240_v38  ;;  %v6269_v38 = vld [vmem:[#allocation9 + $0x2a8] ss:$12 sps:$4 sm:$0xff]  }
 0x1d9   :  { %4466 = vmatprep.subr.bf16.mxu0 %v6247_v40 }
 0x1da   :  { %2379 = vmatpush1.bf16.msra.mxu1 %v6203_v39 }
 0x1db   :  { %5485 = vmatprep.subr.bf16.mxu1 %v6209_v41  ;;  %v6265_v41 = vld [vmem:[#allocation9 + $0x360] ss:$12 sps:$4 sm:$0xff]  }
 0x1dd   :  { %2397 = vmatmul.mubr.bf16.vlgmr.msra.gmra.mrb[12].mxu1 %v6780_v34  ;;  %v405_v34 = vsub.s32 3, %v6797_v49 }
 0x1de   :  { %5486 = vmatpush3.bf16.msra.mxu1 %v6213_v42  ;;  %4670 = vmatprep.mubr.bf16.mxu1 %v6813_v14  ;;  %v6234_v14 = vld [vmem:[#allocation9 + $0x140] ss:$12 sps:$4 sm:$0xff]  }
 0x1df   :  { %5487 = vmatprep.subr.bf16.mxu1 %v6214_v43  ;;  %v406_v56 = vrot.slane %v6799_v52, %v405_v34  ;;  %v6248_v52 = vld [vmem:[#allocation9 + $0xb0] ss:$12 sps:$4 sm:$0xff]  }
 0x1e2   :  { %5488 = vmatpush3.bf16.msra.mxu1 %v6218_v44 }
 0x1e3   :  { %5489 = vmatprep.subr.bf16.mxu1 %v6219_v45  ;;  %v6272_v45 = vld [vmem:[#allocation9 + $0x37c] ss:$12 sps:$4 sm:$0xff]  }
 0x1e6   :  { %5490 = vmatpush3.bf16.msra.mxu1 %v6223_v46 }
 0x1e7   :  { %5491 = vmatprep.subr.bf16.mxu1 %v6224_v47 }
 0x1ea   :  { %5492 = vmatpush3.bf16.msra.mxu1 %v6228_v48  ;;  %v6273_v48 = vld [vmem:[#allocation9 + $0x1e8] ss:$12 sps:$4 sm:$0xff]  }
 0x1eb   :  { %5493 = vmatprep.subr.bf16.mxu1 %v6229_v50 }
 0x1ee   :  { %5494 = vmatpush3.bf16.msra.mxu1 %v6233_v54  ;;  %v6274_v54 = vld [vmem:[#allocation9 + $0x2c0] ss:$12 sps:$4 sm:$0xff]  }
 0x1ef   :  { %5495 = vmatprep.subr.bf16.mxu1 %v6234_v14 }
 0x1f0   :  { %v2054_v62 = vpop.f32.mrb[4].mxu1 }
 0x1f1   :  { %v5621_v63 = vadd.f32 %v2054_v62, %v402_v55  ;;  %v2056_v0 = vpop.f32.mrb[5].mxu1  ;;  %v6278_v62 = vld [vmem:[#allocation9 + $0x200] ss:$12 sps:$4 sm:$0xff]  }
 0x1f2   :  { %v5622_v1 = vadd.f32 %v2056_v0, %v406_v56  ;;  %v2058_v2 = vpop.f32.mrb[6].mxu1  ;;  %5496 = vmatpush3.bf16.msra.mxu1 %v6238_v58  ;;  %v6277_v58 = vld [vmem:[#allocation9 + $0x394] ss:$12 sps:$4 sm:$0xff]   ;;  %v6275_v0 = vld [vmem:[#allocation9 + $0x390] ss:$12 sps:$4 sm:$0xff]  }
 0x1f3   :  { %v5623_v5 = vadd.f32 %v2058_v2, %v402_v55  ;;  %v2060_v6 = vpop.f32.mrb[7].mxu1  ;;  %5497 = vmatprep.subr.bf16.mxu1 %v6239_v59  ;;  %v2409_v9 = vmax.f32 %v5621_v63, 0.0  ;;  %v6270_v55 = vld [vmem:[#allocation9 + $0x378] ss:$12 sps:$4 sm:$0xff]  }
 0x1f4   :  { %v5624_v8 = vadd.f32 %v2060_v6, %v406_v56  ;;  %v2410_v11 = vmax.f32 %v5622_v1, 0.0  ;;  %v6279_v63 = vld [vmem:[#allocation9 + $0x2d8] ss:$12 sps:$4 sm:$0xff]  }
 0x1f5   :  { %v2421_v10 = vmax.f32 %v5623_v5, 0.0  ;;  %v6282_v1 = vld [vmem:[#allocation9 + $0x3ac] ss:$12 sps:$4 sm:$0xff]   ;;  %v6280_v5 = vld [vmem:[#allocation9 + $0x3a8] ss:$12 sps:$4 sm:$0xff]  }
 0x1f6   :  { %v2422_v12 = vmax.f32 %v5624_v8, 0.0  ;;  %5498 = vmatpush3.bf16.msra.mxu1 %v6243_v4  ;;  %v6283_v2 = vld [vmem:[#allocation9 + $0x218] ss:$12 sps:$4 sm:$0xff]   ;;  %v6284_v4 = vld [vmem:[#allocation9 + $0x2f0] ss:$12 sps:$4 sm:$0xff]  }
 0x1f7   :  { %v6838_v15 = vpack.c.bf16 %v2421_v10, %v2409_v9  ;;  %5499 = vmatprep.subr.bf16.mxu1 %v6244_v7  ;;  %v2312_v33 = vpop.f32.mrb[4].mxu0  ;;  %v6287_v6 = vld [vmem:[#allocation9 + $0x3c4] ss:$12 sps:$4 sm:$0xff]   ;;  %v6289_v8 = vld [vmem:[#allocation9 + $0x3c8] ss:$12 sps:$4 sm:$0xff]  }
 0x1f8   :  { %v2434_v17 = vpack.c.bf16 %v2422_v12, %v2410_v11  ;;  %v5633_v36 = vadd.f32 %v2312_v33, %v426_v29  ;;  %v2314_v37 = vpop.f32.mrb[5].mxu0  ;;  %v6288_v7 = vld [vmem:[#allocation9 + $0x230] ss:$12 sps:$4 sm:$0xff]   ;;  %v6285_v9 = vld [vmem:[#allocation9 + $0x3c0] ss:$12 sps:$4 sm:$0xff]  }
 0x1f9   :  { %v5634_v39 = vadd.f32 %v2314_v37, %v430_v30  ;;  %v2316_v40 = vpop.f32.mrb[6].mxu0  ;;  %v6292_v10 = vld [vmem:[#allocation9 + $0x3dc] ss:$12 sps:$4 sm:$0xff]   ;;  %v6294_v12 = vld [vmem:[#allocation9 + $0x3e0] ss:$12 sps:$4 sm:$0xff]  }
 0x1fa   :  { %4455 = vmatprep.mubr.bf16.mxu0 %v2434_v17  ;;  %5500 = vmatpush3.bf16.msra.mxu1 %v6248_v52  ;;  %v2415_v42 = vmax.f32 %v5633_v36, 0.0  ;;  %v5635_v43 = vadd.f32 %v2316_v40, %v426_v29  ;;  %v2318_v44 = vpop.f32.mrb[7].mxu0  ;;  %v6293_v11 = vld [vmem:[#allocation9 + $0x308] ss:$12 sps:$4 sm:$0xff]   ;;  %v6290_v52 = vld [vmem:[#allocation9 + $0x3d8] ss:$12 sps:$4 sm:$0xff]  }
 0x1fb   :  { %4456 = vmatmul.mubr.bf16.vlgmr.msra.gmra.mrb[8].mxu0 %v6838_v15  ;;  %5507 = vmatprep.subr.bf16.mxu1 %v6249_v16  ;;  %v2416_v46 = vmax.f32 %v5634_v39, 0.0  ;;  %v5636_v47 = vadd.f32 %v2318_v44, %v430_v30  ;;  %v6297_v16 = vld [vmem:[#allocation9 + $0x3f4] ss:$12 sps:$4 sm:$0xff]   ;;  %v6310_v29 = vld [vmem:[#allocation9 + $0x438] ss:$12 sps:$4 sm:$0xff]  }
 0x1fc   :  { %4467 = vmatpush1.bf16.msra.mxu0 %v6245_v18  ;;  %4498 = vmatprep.mubr.bf16.mxu0 %v6823_v60  ;;  %v2427_v50 = vmax.f32 %v5635_v43, 0.0  ;;  %v6299_v18 = vld [vmem:[#allocation9 + $0x3f8] ss:$12 sps:$4 sm:$0xff]   ;;  %v6318_v30 = vld [vmem:[#allocation9 + $0x380] ss:$12 sps:$4 sm:$0xff]  }
 0x1fd   :  { %4671 = vmatmul.mubr.bf16.vlgmr.msra.gmra.mrb[16].mxu1 %v6811_v13  ;;  %4468 = vmatprep.subr.bf16.mxu0 %v6252_v19  ;;  %v6264_v13 = vld [vmem:[#allocation9 + $0x290] ss:$12 sps:$4 sm:$0xff]   ;;  %v2428_v14 = vmax.f32 %v5636_v47, 0.0  ;;  %v6322_v33 = vld [vmem:[#allocation9 + $0x46c] ss:$12 sps:$4 sm:$0xff]  }
 0x1fe   :  { %5508 = vmatpush3.bf16.msra.mxu1 %v6253_v21  ;;  %4711 = vmatprep.mubr.bf16.mxu1 %v2434_v17  ;;  %v6849_v56 = vpack.c.bf16 %v2427_v50, %v2415_v42  ;;  %v6298_v17 = vld [vmem:[#allocation9 + $0x320] ss:$12 sps:$4 sm:$0xff]   ;;  %v6295_v19 = vld [vmem:[#allocation9 + $0x3f0] ss:$12 sps:$4 sm:$0xff]   ;;  %v6320_v37 = vld [vmem:[#allocation9 + $0x468] ss:$12 sps:$4 sm:$0xff]  }
 0x1ff   :  { %5509 = vmatprep.subr.bf16.mxu1 %v6254_v22  ;;  %v6851_v59 = vpack.c.bf16 %v2428_v14, %v2416_v46  ;;  %v6302_v21 = vld [vmem:[#allocation9 + $0x40c] ss:$12 sps:$4 sm:$0xff]   ;;  %v6324_v36 = vld [vmem:[#allocation9 + $0x470] ss:$12 sps:$4 sm:$0xff]   ;;  %v6329_v40 = vld [vmem:[#allocation9 + $0x548] ss:$12 sps:$4 sm:$0xff]  }
 0x200   :  { %4469 = vmatpush1.bf16.msra.mxu0 %v6250_v23  ;;  %v6303_v22 = vld [vmem:[#allocation9 + $0x338] ss:$12 sps:$4 sm:$0xff]   ;;  %v6304_v23 = vld [vmem:[#allocation9 + $0x410] ss:$12 sps:$4 sm:$0xff]   ;;  %v6333_v43 = vld [vmem:[#allocation9 + $0x488] ss:$12 sps:$4 sm:$0xff]  }
 0x201   :  { %4470 = vmatprep.subr.bf16.mxu0 %v6257_v24  ;;  %v6300_v24 = vld [vmem:[#allocation9 + $0x408] ss:$12 sps:$4 sm:$0xff]   ;;  %v6328_v39 = vld [vmem:[#allocation9 + $0x3b0] ss:$12 sps:$4 sm:$0xff]   ;;  %v6334_v44 = vld [vmem:[#allocation9 + $0x560] ss:$12 sps:$4 sm:$0xff]  }
 0x202   :  { %5510 = vmatpush3.bf16.msra.mxu1 %v6258_v61  ;;  %v6308_v61 = vld [vmem:[#allocation9 + $0x350] ss:$12 sps:$4 sm:$0xff]   ;;  %v6337_v46 = vld [vmem:[#allocation9 + $0x4b4] ss:$12 sps:$4 sm:$0xff]   ;;  %v6343_v14 = vld [vmem:[#allocation9 + $0x4b8] ss:$12 sps:$4 sm:$0xff]  }
 0x203   :  { %5511 = vmatprep.subr.bf16.mxu1 %v6259_v25  ;;  %v6309_v25 = vld [vmem:[#allocation9 + $0x428] ss:$12 sps:$4 sm:$0xff]   ;;  %v6338_v47 = vld [vmem:[#allocation9 + $0x4a0] ss:$12 sps:$4 sm:$0xff]   ;;  %v6335_v50 = vld [vmem:[#allocation9 + $0x4b0] ss:$12 sps:$4 sm:$0xff]  }
 0x204   :  { %4471 = vmatpush1.bf16.msra.mxu0 %v6255_v3  ;;  %v6312_v3 = vld [vmem:[#allocation9 + $0x43c] ss:$12 sps:$4 sm:$0xff]  }
 0x205   :  { %4472 = vmatprep.subr.bf16.mxu0 %v6262_v27  ;;  %v6313_v27 = vld [vmem:[#allocation9 + $0x368] ss:$12 sps:$4 sm:$0xff]  }
 0x206   :  { %5512 = vmatpush3.bf16.msra.mxu1 %v6263_v28  ;;  %v6314_v28 = vld [vmem:[#allocation9 + $0x440] ss:$12 sps:$4 sm:$0xff]   ;;  %v6332_v42 = vld [vmem:[#allocation9 + $0x49c] ss:$12 sps:$4 sm:$0xff]  }
 0x207   :  { %5513 = vmatprep.subr.bf16.mxu1 %v6264_v13  ;;  %v6317_v13 = vld [vmem:[#allocation9 + $0x454] ss:$12 sps:$4 sm:$0xff]  }
 0x208   :  { %4473 = vmatpush1.bf16.msra.mxu0 %v6260_v31  ;;  %v6319_v31 = vld [vmem:[#allocation9 + $0x458] ss:$12 sps:$4 sm:$0xff]  }
 0x209   :  { %4474 = vmatprep.subr.bf16.mxu0 %v6267_v32  ;;  %v6315_v32 = vld [vmem:[#allocation9 + $0x450] ss:$12 sps:$4 sm:$0xff]  }
 0x20a   :  { %5514 = vmatpush3.bf16.msra.mxu1 %v6268_v35  ;;  %v6323_v35 = vld [vmem:[#allocation9 + $0x398] ss:$12 sps:$4 sm:$0xff]  }
 0x20b   :  { %5515 = vmatprep.subr.bf16.mxu1 %v6269_v38  ;;  %v6327_v38 = vld [vmem:[#allocation9 + $0x484] ss:$12 sps:$4 sm:$0xff]  }
 0x20c   :  { %4475 = vmatpush1.bf16.msra.mxu0 %v6265_v41  ;;  %v6325_v41 = vld [vmem:[#allocation9 + $0x480] ss:$12 sps:$4 sm:$0xff]  }
 0x20d   :  { %4476 = vmatprep.subr.bf16.mxu0 %v6272_v45  ;;  %v6330_v45 = vld [vmem:[#allocation9 + $0x498] ss:$12 sps:$4 sm:$0xff]  }
 0x20e   :  { %5516 = vmatpush3.bf16.msra.mxu1 %v6273_v48  ;;  %v6339_v48 = vld [vmem:[#allocation9 + $0x578] ss:$12 sps:$4 sm:$0xff]  }
 0x20f   :  { %5517 = vmatprep.subr.bf16.mxu1 %v6274_v54  ;;  %v6342_v54 = vld [vmem:[#allocation9 + $0x4cc] ss:$12 sps:$4 sm:$0xff]  }
 0x210   :  { %4477 = vmatpush1.bf16.msra.mxu0 %v6270_v55  ;;  %v6344_v55 = vld [vmem:[#allocation9 + $0x590] ss:$12 sps:$4 sm:$0xff]  }
 0x211   :  { %4478 = vmatprep.subr.bf16.mxu0 %v6277_v58  ;;  %v6340_v58 = vld [vmem:[#allocation9 + $0x4c8] ss:$12 sps:$4 sm:$0xff]  }
 0x212   :  { %5518 = vmatpush3.bf16.msra.mxu1 %v6278_v62  ;;  %v6347_v62 = vld [vmem:[#allocation9 + $0x4e4] ss:$12 sps:$4 sm:$0xff]  }
 0x213   :  { %5519 = vmatprep.subr.bf16.mxu1 %v6279_v63  ;;  %v6349_v63 = vld [vmem:[#allocation9 + $0x5a8] ss:$12 sps:$4 sm:$0xff]  }
 0x214   :  { %4479 = vmatpush1.bf16.msra.mxu0 %v6275_v0  ;;  %v6345_v0 = vld [vmem:[#allocation9 + $0x4e0] ss:$12 sps:$4 sm:$0xff]  }
 0x215   :  { %4480 = vmatprep.subr.bf16.mxu0 %v6282_v1  ;;  %v6352_v1 = vld [vmem:[#allocation9 + $0x4fc] ss:$12 sps:$4 sm:$0xff]  }
 0x216   :  { %5520 = vmatpush3.bf16.msra.mxu1 %v6283_v2  ;;  %v417_v2 = vsub.s32 6, %v6797_v49 }
 0x217   :  { %5521 = vmatprep.subr.bf16.mxu1 %v6284_v4  ;;  %v6353_v4 = vld [vmem:[#allocation9 + $0x4e8] ss:$12 sps:$4 sm:$0xff]  }
 0x218   :  { %4481 = vmatpush1.bf16.msra.mxu0 %v6280_v5  ;;  %v421_v5 = vsub.s32 7, %v6797_v49  ;;  %v6472_v49 = vld [vmem:[#allocation9 + $0x784] ss:$12 sps:$4 sm:$0xff]  }
 0x219   :  { %4482 = vmatprep.subr.bf16.mxu0 %v6287_v6  ;;  %v6354_v6 = vld [vmem:[#allocation9 + $0x5c0] ss:$12 sps:$4 sm:$0xff]  }
 0x21a   :  { %5522 = vmatpush3.bf16.msra.mxu1 %v6288_v7  ;;  %v6350_v7 = vld [vmem:[#allocation9 + $0x4f8] ss:$12 sps:$4 sm:$0xff]  }
 0x21b   :  { %5529 = vmatprep.subr.bf16.mxu1 %v6289_v8  ;;  %v6518_v8 = vld [vmem:[#allocation8] sm:$0xff] }
 0x21c   :  { %4483 = vmatpush1.bf16.msra.mxu0 %v6285_v9  ;;  %v418_v9 = vrot.slane %v6518_v8, %v417_v2  ;;  %v6399_v2 = vld [vmem:[#allocation9 + $0x758] ss:$12 sps:$4 sm:$0xff]  }
 0x21d   :  { %4712 = vmatmul.mubr.bf16.vlgmr.msra.gmra.mrb[20].mxu1 %v6838_v15  ;;  %4484 = vmatprep.subr.bf16.mxu0 %v6292_v10  ;;  %v6307_v15 = vld [vmem:[#allocation9 + $0x424] ss:$12 sps:$4 sm:$0xff]   ;;  %v6357_v10 = vld [vmem:[#allocation9 + $0x514] ss:$12 sps:$4 sm:$0xff]  }
 0x21e   :  { %5530 = vmatpush3.bf16.msra.mxu1 %v6293_v11  ;;  %4752 = vmatprep.mubr.bf16.mxu1 %v6823_v60  ;;  %v6305_v60 = vld [vmem:[#allocation9 + $0x420] ss:$12 sps:$4 sm:$0xff]   ;;  %v422_v11 = vrot.slane %v6518_v8, %v421_v5  ;;  %v6400_v8 = vld [vmem:[#allocation9 + $0x5e8] ss:$12 sps:$4 sm:$0xff]  }
 0x21f   :  { %5531 = vmatprep.subr.bf16.mxu1 %v6294_v12  ;;  %v6358_v12 = vld [vmem:[#allocation9 + $0x500] ss:$12 sps:$4 sm:$0xff]  }
 0x220   :  { %4485 = vmatpush1.bf16.msra.mxu0 %v6290_v52  ;;  %v6359_v52 = vld [vmem:[#allocation9 + $0x5d8] ss:$12 sps:$4 sm:$0xff]  }
 0x221   :  { %4486 = vmatprep.subr.bf16.mxu0 %v6297_v16  ;;  %v6402_v5 = vld [vmem:[#allocation9 + $0x5ec] ss:$12 sps:$4 sm:$0xff]  }
 0x222   :  { %5532 = vmatpush3.bf16.msra.mxu1 %v6298_v17  ;;  %v6355_v17 = vld [vmem:[#allocation9 + $0x510] ss:$12 sps:$4 sm:$0xff]  }
 0x223   :  { %5533 = vmatprep.subr.bf16.mxu1 %v6299_v18 }
 0x224   :  { %4487 = vmatpush1.bf16.msra.mxu0 %v6295_v19 }
 0x225   :  { %4488 = vmatprep.subr.bf16.mxu0 %v6302_v21  ;;  %v6362_v21 = vld [vmem:[#allocation9 + $0x52c] ss:$12 sps:$4 sm:$0xff]  }
 0x226   :  { %5534 = vmatpush3.bf16.msra.mxu1 %v6303_v22 }
 0x227   :  { %5535 = vmatprep.subr.bf16.mxu1 %v6304_v23 }
 0x228   :  { %4489 = vmatpush1.bf16.msra.mxu0 %v6300_v24  ;;  %v6363_v24 = vld [vmem:[#allocation9 + $0x518] ss:$12 sps:$4 sm:$0xff]  }
 0x229   :  { %4490 = vmatprep.subr.bf16.mxu0 %v6307_v15 }
 0x22a   :  { %5536 = vmatpush3.bf16.msra.mxu1 %v6308_v61 }
 0x22b   :  { %5537 = vmatprep.subr.bf16.mxu1 %v6309_v25 }
 0x22c   :  { %4491 = vmatpush1.bf16.msra.mxu0 %v6305_v60  ;;  %v6364_v60 = vld [vmem:[#allocation9 + $0x5f0] ss:$12 sps:$4 sm:$0xff]  }
 0x22d   :  { %4492 = vmatprep.subr.bf16.mxu0 %v6312_v3 }
 0x22e   :  { %5538 = vmatpush3.bf16.msra.mxu1 %v6313_v27  ;;  %v6360_v27 = vld [vmem:[#allocation9 + $0x528] ss:$12 sps:$4 sm:$0xff]  }
 0x22f   :  { %5539 = vmatprep.subr.bf16.mxu1 %v6314_v28 }
 0x230   :  { %4493 = vmatpush1.bf16.msra.mxu0 %v6310_v29  ;;  %v6367_v29 = vld [vmem:[#allocation9 + $0x544] ss:$12 sps:$4 sm:$0xff]  }
 0x231   :  { %4494 = vmatprep.subr.bf16.mxu0 %v6317_v13 }
 0x232   :  { %5540 = vmatpush3.bf16.msra.mxu1 %v6318_v30 }
 0x233   :  { %5541 = vmatprep.subr.bf16.mxu1 %v6319_v31  ;;  %v6368_v31 = vld [vmem:[#allocation9 + $0x530] ss:$12 sps:$4 sm:$0xff]  }
 0x234   :  { %4495 = vmatpush1.bf16.msra.mxu0 %v6315_v32 }
 0x235   :  { %4496 = vmatprep.subr.bf16.mxu0 %v6322_v33  ;;  %v6369_v33 = vld [vmem:[#allocation9 + $0x6c8] ss:$12 sps:$4 sm:$0xff]  }
 0x236   :  { %5542 = vmatpush3.bf16.msra.mxu1 %v6323_v35 }
 0x237   :  { %5543 = vmatprep.subr.bf16.mxu1 %v6324_v36  ;;  %v6365_v36 = vld [vmem:[#allocation9 + $0x540] ss:$12 sps:$4 sm:$0xff]  }
 0x238   :  { %4497 = vmatpush1.bf16.msra.mxu0 %v6320_v37  ;;  %v6372_v37 = vld [vmem:[#allocation9 + $0x55c] ss:$12 sps:$4 sm:$0xff]  }
 0x239   :  { %4509 = vmatprep.subr.bf16.mxu0 %v6327_v38  ;;  %v6373_v38 = vld [vmem:[#allocation9 + $0x608] ss:$12 sps:$4 sm:$0xff]  }
 0x23a   :  { %5544 = vmatpush3.bf16.msra.mxu1 %v6328_v39  ;;  %v6374_v39 = vld [vmem:[#allocation9 + $0x6e0] ss:$12 sps:$4 sm:$0xff]  }
 0x23b   :  { %4499 = vmatmul.mubr.bf16.vlgmr.msra.gmra.mrb[8].mxu0 %v6821_v57  ;;  %5551 = vmatprep.subr.bf16.mxu1 %v6329_v40  ;;  %v6370_v40 = vld [vmem:[#allocation9 + $0x558] ss:$12 sps:$4 sm:$0xff]  }
 0x23c   :  { %4510 = vmatpush1.bf16.msra.mxu0 %v6325_v41  ;;  %v6377_v41 = vld [vmem:[#allocation9 + $0x574] ss:$12 sps:$4 sm:$0xff]  }
 0x23d   :  { %4753 = vmatmul.mubr.bf16.vlgmr.msra.gmra.mrb[24].mxu1 %v6821_v57  ;;  %4511 = vmatprep.subr.bf16.mxu0 %v6332_v42  ;;  %v6348_v57 = vld [vmem:[#allocation9 + $0x4d0] ss:$12 sps:$4 sm:$0xff]   ;;  %v6378_v42 = vld [vmem:[#allocation9 + $0x620] ss:$12 sps:$4 sm:$0xff]  }
 0x23e   :  { %5552 = vmatpush3.bf16.msra.mxu1 %v6333_v43  ;;  %v6379_v43 = vld [vmem:[#allocation9 + $0x6f8] ss:$12 sps:$4 sm:$0xff]  }
 0x23f   :  { %5553 = vmatprep.subr.bf16.mxu1 %v6334_v44  ;;  %v6375_v44 = vld [vmem:[#allocation9 + $0x570] ss:$12 sps:$4 sm:$0xff]  }
 0x240   :  { %4512 = vmatpush1.bf16.msra.mxu0 %v6330_v45  ;;  %v6382_v45 = vld [vmem:[#allocation9 + $0x58c] ss:$12 sps:$4 sm:$0xff]  }
 0x241   :  { %4513 = vmatprep.subr.bf16.mxu0 %v6337_v46  ;;  %v6383_v46 = vld [vmem:[#allocation9 + $0x638] ss:$12 sps:$4 sm:$0xff]  }
 0x242   :  { %5554 = vmatpush3.bf16.msra.mxu1 %v6338_v47  ;;  %v6384_v47 = vld [vmem:[#allocation9 + $0x710] ss:$12 sps:$4 sm:$0xff]  }
 0x243   :  { %5555 = vmatprep.subr.bf16.mxu1 %v6339_v48  ;;  %v6380_v48 = vld [vmem:[#allocation9 + $0x588] ss:$12 sps:$4 sm:$0xff]  }
 0x244   :  { %4514 = vmatpush1.bf16.msra.mxu0 %v6335_v50  ;;  %v6387_v50 = vld [vmem:[#allocation9 + $0x5a4] ss:$12 sps:$4 sm:$0xff]  }
 0x245   :  { %4515 = vmatprep.subr.bf16.mxu0 %v6342_v54  ;;  %v6388_v54 = vld [vmem:[#allocation9 + $0x650] ss:$12 sps:$4 sm:$0xff]  }
 0x246   :  { %5556 = vmatpush3.bf16.msra.mxu1 %v6343_v14  ;;  %v6389_v14 = vld [vmem:[#allocation9 + $0x728] ss:$12 sps:$4 sm:$0xff]  }
 0x247   :  { %5557 = vmatprep.subr.bf16.mxu1 %v6344_v55  ;;  %v6385_v55 = vld [vmem:[#allocation9 + $0x5a0] ss:$12 sps:$4 sm:$0xff]  }
 0x248   :  { %4516 = vmatpush1.bf16.msra.mxu0 %v6340_v58  ;;  %v6392_v58 = vld [vmem:[#allocation9 + $0x5bc] ss:$12 sps:$4 sm:$0xff]  }
 0x249   :  { %4517 = vmatprep.subr.bf16.mxu0 %v6347_v62  ;;  %v6393_v62 = vld [vmem:[#allocation9 + $0x668] ss:$12 sps:$4 sm:$0xff]  }
 0x24a   :  { %5558 = vmatpush3.bf16.msra.mxu1 %v6348_v57  ;;  %v6394_v57 = vld [vmem:[#allocation9 + $0x740] ss:$12 sps:$4 sm:$0xff]  }
 0x24b   :  { %5559 = vmatprep.subr.bf16.mxu1 %v6349_v63  ;;  %v6390_v63 = vld [vmem:[#allocation9 + $0x5b8] ss:$12 sps:$4 sm:$0xff]  }
 0x24c   :  { %4518 = vmatpush1.bf16.msra.mxu0 %v6345_v0  ;;  %v6397_v0 = vld [vmem:[#allocation9 + $0x5d4] ss:$12 sps:$4 sm:$0xff]  }
 0x24d   :  { %4519 = vmatprep.subr.bf16.mxu0 %v6352_v1  ;;  %v6398_v1 = vld [vmem:[#allocation9 + $0x680] ss:$12 sps:$4 sm:$0xff]  }
 0x24e   :  { %5560 = vmatpush3.bf16.msra.mxu1 %v6353_v4  ;;  %v6395_v4 = vld [vmem:[#allocation9 + $0x5d0] ss:$12 sps:$4 sm:$0xff]  }
 0x24f   :  { %5561 = vmatprep.subr.bf16.mxu1 %v6354_v6  ;;  %v6403_v6 = vld [vmem:[#allocation9 + $0x698] ss:$12 sps:$4 sm:$0xff]  }
 0x250   :  { %4520 = vmatpush1.bf16.msra.mxu0 %v6350_v7  ;;  %v2226_v16 = vpop.f32.mrb[8].mxu1  ;;  %v6404_v7 = vld [vmem:[#allocation9 + $0x770] ss:$12 sps:$4 sm:$0xff]  }
 0x251   :  { %v5629_v18 = vadd.f32 %v2226_v16, %v418_v9  ;;  %v2228_v19 = vpop.f32.mrb[9].mxu1  ;;  %4521 = vmatprep.subr.bf16.mxu0 %v6357_v10  ;;  %v6408_v10 = vld [vmem:[#allocation9 + $0x6b0] ss:$12 sps:$4 sm:$0xff]   ;;  %v6434_v16 = vld [vmem:[#allocation9 + $0x788] ss:$12 sps:$4 sm:$0xff]  }
 0x252   :  { %v5630_v22 = vadd.f32 %v2228_v19, %v422_v11  ;;  %v2230_v23 = vpop.f32.mrb[10].mxu1  ;;  %5562 = vmatpush3.bf16.msra.mxu1 %v6358_v12  ;;  %v6405_v12 = vld [vmem:[#allocation9 + $0x600] ss:$12 sps:$4 sm:$0xff]  }
 0x253   :  { %v2413_v15 = vmax.f32 %v5629_v18, 0.0  ;;  %v5631_v61 = vadd.f32 %v2230_v23, %v418_v9  ;;  %v2232_v25 = vpop.f32.mrb[11].mxu1  ;;  %5563 = vmatprep.subr.bf16.mxu1 %v6359_v52  ;;  %v6407_v9 = vld [vmem:[#allocation9 + $0x604] ss:$12 sps:$4 sm:$0xff]   ;;  %v6411_v52 = vld [vmem:[#allocation9 + $0x61c] ss:$12 sps:$4 sm:$0xff]  }
 0x254   :  { %v5632_v3 = vadd.f32 %v2232_v25, %v422_v11  ;;  %4522 = vmatpush1.bf16.msra.mxu0 %v6355_v17  ;;  %v2414_v13 = vmax.f32 %v5630_v22, 0.0  ;;  %v6433_v11 = vld [vmem:[#allocation9 + $0x848] ss:$12 sps:$4 sm:$0xff]   ;;  %v6438_v17 = vld [vmem:[#allocation9 + $0x860] ss:$12 sps:$4 sm:$0xff]  }
 0x255   :  { %v2425_v28 = vmax.f32 %v5631_v61, 0.0  ;;  %4523 = vmatprep.subr.bf16.mxu0 %v6362_v21  ;;  %v6409_v18 = vld [vmem:[#allocation9 + $0x618] ss:$12 sps:$4 sm:$0xff]   ;;  %v6414_v19 = vld [vmem:[#allocation9 + $0x634] ss:$12 sps:$4 sm:$0xff]  }
 0x256   :  { %v2426_v30 = vmax.f32 %v5632_v3, 0.0  ;;  %5564 = vmatpush3.bf16.msra.mxu1 %v6363_v24  ;;  %v6439_v21 = vld [vmem:[#allocation9 + $0x7a0] ss:$12 sps:$4 sm:$0xff]   ;;  %v6443_v22 = vld [vmem:[#allocation9 + $0x878] ss:$12 sps:$4 sm:$0xff]  }
 0x257   :  { %v6859_v32 = vpack.c.bf16 %v2425_v28, %v2413_v15  ;;  %5565 = vmatprep.subr.bf16.mxu1 %v6364_v60  ;;  %v6412_v23 = vld [vmem:[#allocation9 + $0x630] ss:$12 sps:$4 sm:$0xff]   ;;  %v6417_v24 = vld [vmem:[#allocation9 + $0x64c] ss:$12 sps:$4 sm:$0xff]   ;;  %v6415_v25 = vld [vmem:[#allocation9 + $0x648] ss:$12 sps:$4 sm:$0xff]  }
 0x258   :  { %v2438_v35 = vpack.c.bf16 %v2426_v30, %v2414_v13  ;;  %4524 = vmatpush1.bf16.msra.mxu0 %v6360_v27  ;;  %v6444_v15 = vld [vmem:[#allocation9 + $0x7b8] ss:$12 sps:$4 sm:$0xff]   ;;  %v6448_v61 = vld [vmem:[#allocation9 + $0x890] ss:$12 sps:$4 sm:$0xff]   ;;  %v6453_v3 = vld [vmem:[#allocation9 + $0x8a8] ss:$12 sps:$4 sm:$0xff]  }
 0x259   :  { %4525 = vmatprep.subr.bf16.mxu0 %v6367_v29  ;;  %v6449_v60 = vld [vmem:[#allocation9 + $0x7d0] ss:$12 sps:$4 sm:$0xff]   ;;  %v6418_v27 = vld [vmem:[#allocation9 + $0x660] ss:$12 sps:$4 sm:$0xff]   ;;  %v6454_v29 = vld [vmem:[#allocation9 + $0x7e8] ss:$12 sps:$4 sm:$0xff]  }
 0x25a   :  { %4541 = vmatprep.mubr.bf16.mxu0 %v2438_v35  ;;  %5566 = vmatpush3.bf16.msra.mxu1 %v6368_v31  ;;  %v6423_v28 = vld [vmem:[#allocation9 + $0x67c] ss:$12 sps:$4 sm:$0xff]   ;;  %v6458_v13 = vld [vmem:[#allocation9 + $0x8c0] ss:$12 sps:$4 sm:$0xff]   ;;  %v6421_v30 = vld [vmem:[#allocation9 + $0x678] ss:$12 sps:$4 sm:$0xff]  }
 0x25b   :  { %4793 = vmatprep.mubr.bf16.mxu1 %v2438_v35  ;;  %5573 = vmatprep.subr.bf16.mxu1 %v6369_v33  ;;  %v6426_v31 = vld [vmem:[#allocation9 + $0x694] ss:$12 sps:$4 sm:$0xff]   ;;  %v6463_v33 = vld [vmem:[#allocation9 + $0x8d8] ss:$12 sps:$4 sm:$0xff]   ;;  %v6424_v35 = vld [vmem:[#allocation9 + $0x690] ss:$12 sps:$4 sm:$0xff]  }
 0x25c   :  { %4526 = vmatpush1.bf16.msra.mxu0 %v6365_v36  ;;  %v6429_v36 = vld [vmem:[#allocation9 + $0x6ac] ss:$12 sps:$4 sm:$0xff]  }
 0x25d   :  { %4794 = vmatmul.mubr.bf16.vlgmr.msra.gmra.mrb[28].mxu1 %v6859_v32  ;;  %4527 = vmatprep.subr.bf16.mxu0 %v6372_v37  ;;  %v6464_v37 = vld [vmem:[#allocation9 + $0x818] ss:$12 sps:$4 sm:$0xff]  }
 0x25e   :  { %5574 = vmatpush3.bf16.msra.mxu1 %v6373_v38  ;;  %4834 = vmatprep.mubr.bf16.mxu1 %v6851_v59  ;;  %v6468_v38 = vld [vmem:[#allocation9 + $0x8f0] ss:$12 sps:$4 sm:$0xff]  }
 0x25f   :  { %5575 = vmatprep.subr.bf16.mxu1 %v6374_v39  ;;  %v6427_v39 = vld [vmem:[#allocation9 + $0x6a8] ss:$12 sps:$4 sm:$0xff]  }
 0x260   :  { %4528 = vmatpush1.bf16.msra.mxu0 %v6370_v40  ;;  %v6432_v40 = vld [vmem:[#allocation9 + $0x6c4] ss:$12 sps:$4 sm:$0xff]  }
 0x261   :  { %4529 = vmatprep.subr.bf16.mxu0 %v6377_v41  ;;  %v6469_v41 = vld [vmem:[#allocation9 + $0x830] ss:$12 sps:$4 sm:$0xff]  }
 0x262   :  { %5576 = vmatpush3.bf16.msra.mxu1 %v6378_v42  ;;  %v6430_v42 = vld [vmem:[#allocation9 + $0x6c0] ss:$12 sps:$4 sm:$0xff]  }
 0x263   :  { %5577 = vmatprep.subr.bf16.mxu1 %v6379_v43  ;;  %v6437_v43 = vld [vmem:[#allocation9 + $0x6dc] ss:$12 sps:$4 sm:$0xff]  }
 0x264   :  { %4530 = vmatpush1.bf16.msra.mxu0 %v6375_v44  ;;  %v6435_v44 = vld [vmem:[#allocation9 + $0x6d8] ss:$12 sps:$4 sm:$0xff]  }
 0x265   :  { %4531 = vmatprep.subr.bf16.mxu0 %v6382_v45  ;;  %v6442_v45 = vld [vmem:[#allocation9 + $0x6f4] ss:$12 sps:$4 sm:$0xff]  }
 0x266   :  { %5578 = vmatpush3.bf16.msra.mxu1 %v6383_v46  ;;  %v6440_v46 = vld [vmem:[#allocation9 + $0x6f0] ss:$12 sps:$4 sm:$0xff]  }
 0x267   :  { %5579 = vmatprep.subr.bf16.mxu1 %v6384_v47  ;;  %v6447_v47 = vld [vmem:[#allocation9 + $0x70c] ss:$12 sps:$4 sm:$0xff]  }
 0x268   :  { %4532 = vmatpush1.bf16.msra.mxu0 %v6380_v48  ;;  %v6445_v48 = vld [vmem:[#allocation9 + $0x708] ss:$12 sps:$4 sm:$0xff]  }
 0x269   :  { %4533 = vmatprep.subr.bf16.mxu0 %v6387_v50  ;;  %v6452_v50 = vld [vmem:[#allocation9 + $0x724] ss:$12 sps:$4 sm:$0xff]  }
 0x26a   :  { %5580 = vmatpush3.bf16.msra.mxu1 %v6388_v54  ;;  %v6450_v54 = vld [vmem:[#allocation9 + $0x720] ss:$12 sps:$4 sm:$0xff]  }
 0x26b   :  { %5581 = vmatprep.subr.bf16.mxu1 %v6389_v14  ;;  %v6457_v14 = vld [vmem:[#allocation9 + $0x73c] ss:$12 sps:$4 sm:$0xff]  }
 0x26c   :  { %4534 = vmatpush1.bf16.msra.mxu0 %v6385_v55  ;;  %v6455_v55 = vld [vmem:[#allocation9 + $0x738] ss:$12 sps:$4 sm:$0xff]  }
 0x26d   :  { %4535 = vmatprep.subr.bf16.mxu0 %v6392_v58  ;;  %v434_v58 = vrot.slane %v6843_v26, %v6830_v51 }
 0x26e   :  { %5582 = vmatpush3.bf16.msra.mxu1 %v6393_v62  ;;  %v6462_v62 = vld [vmem:[#allocation9 + $0x754] ss:$12 sps:$4 sm:$0xff]  }
 0x26f   :  { %5583 = vmatprep.subr.bf16.mxu1 %v6394_v57  ;;  %v438_v57 = vrot.slane %v6843_v26, %v405_v34 }
 0x270   :  { %4536 = vmatpush1.bf16.msra.mxu0 %v6390_v63 }
 0x271   :  { %4537 = vmatprep.subr.bf16.mxu0 %v6397_v0  ;;  %v6460_v0 = vld [vmem:[#allocation9 + $0x750] ss:$12 sps:$4 sm:$0xff]  }
 0x272   :  { %5584 = vmatpush3.bf16.msra.mxu1 %v6398_v1 }
 0x273   :  { %5585 = vmatprep.subr.bf16.mxu1 %v6399_v2 }
 0x274   :  { %4538 = vmatpush1.bf16.msra.mxu0 %v6395_v4  ;;  %v6467_v4 = vld [vmem:[#allocation9 + $0x76c] ss:$12 sps:$4 sm:$0xff]  }
 0x275   :  { %4539 = vmatprep.subr.bf16.mxu0 %v6402_v5 }
 0x276   :  { %5586 = vmatpush3.bf16.msra.mxu1 %v6403_v6 }
 0x277   :  { %5587 = vmatprep.subr.bf16.mxu1 %v6404_v7 }
 0x278   :  { %4540 = vmatpush1.bf16.msra.mxu0 %v6400_v8 }
 0x279   :  { %4552 = vmatprep.subr.bf16.mxu0 %v6407_v9 }
 0x27a   :  { %5588 = vmatpush3.bf16.msra.mxu1 %v6408_v10 }
 0x27b   :  { %4542 = vmatmul.mubr.bf16.vlgmr.msra.gmra.mrb[8].mxu0 %v6859_v32  ;;  %5595 = vmatprep.subr.bf16.mxu1 %v6433_v11  ;;  %v6459_v32 = vld [vmem:[#allocation9 + $0x800] ss:$12 sps:$4 sm:$0xff]  }
 0x27c   :  { %4553 = vmatpush1.bf16.msra.mxu0 %v6405_v12  ;;  %4584 = vmatprep.mubr.bf16.mxu0 %v6851_v59  ;;  %v6420_v59 = vld [vmem:[#allocation9 + $0x664] ss:$12 sps:$4 sm:$0xff]   ;;  %v6465_v12 = vld [vmem:[#allocation9 + $0x768] ss:$12 sps:$4 sm:$0xff]  }
 0x27d   :  { %4835 = vmatmul.mubr.bf16.vlgmr.msra.gmra.mrb[32].mxu1 %v6849_v56  ;;  %4554 = vmatprep.subr.bf16.mxu0 %v6411_v52 }
 0x27e   :  { %5596 = vmatpush3.bf16.msra.mxu1 %v6434_v16 }
 0x27f   :  { %5597 = vmatprep.subr.bf16.mxu1 %v6438_v17  ;;  %v6470_v17 = vld [vmem:[#allocation9 + $0x780] ss:$12 sps:$4 sm:$0xff]  }
 0x280   :  { %4555 = vmatpush1.bf16.msra.mxu0 %v6409_v18  ;;  %v6475_v18 = vld [vmem:[#allocation9 + $0x79c] ss:$12 sps:$4 sm:$0xff]  }
 0x281   :  { %4556 = vmatprep.subr.bf16.mxu0 %v6414_v19  ;;  %v6473_v19 = vld [vmem:[#allocation9 + $0x798] ss:$12 sps:$4 sm:$0xff]  }
 0x282   :  { %5598 = vmatpush3.bf16.msra.mxu1 %v6439_v21  ;;  %v6478_v21 = vld [vmem:[#allocation9 + $0x7b4] ss:$12 sps:$4 sm:$0xff]  }
 0x283   :  { %5599 = vmatprep.subr.bf16.mxu1 %v6443_v22  ;;  %v6476_v22 = vld [vmem:[#allocation9 + $0x7b0] ss:$12 sps:$4 sm:$0xff]  }
 0x284   :  { %4557 = vmatpush1.bf16.msra.mxu0 %v6412_v23  ;;  %v6481_v23 = vld [vmem:[#allocation9 + $0x7cc] ss:$12 sps:$4 sm:$0xff]  }
 0x285   :  { %4558 = vmatprep.subr.bf16.mxu0 %v6417_v24  ;;  %v6479_v24 = vld [vmem:[#allocation9 + $0x7c8] ss:$12 sps:$4 sm:$0xff]  }
 0x286   :  { %5600 = vmatpush3.bf16.msra.mxu1 %v6444_v15  ;;  %v6484_v15 = vld [vmem:[#allocation9 + $0x7e4] ss:$12 sps:$4 sm:$0xff]  }
 0x287   :  { %5601 = vmatprep.subr.bf16.mxu1 %v6448_v61  ;;  %v6482_v61 = vld [vmem:[#allocation9 + $0x7e0] ss:$12 sps:$4 sm:$0xff]  }
 0x288   :  { %4559 = vmatpush1.bf16.msra.mxu0 %v6415_v25  ;;  %v6487_v25 = vld [vmem:[#allocation9 + $0x7fc] ss:$12 sps:$4 sm:$0xff]  }
 0x289   :  { %4560 = vmatprep.subr.bf16.mxu0 %v6420_v59  ;;  %v6490_v59 = vld [vmem:[#allocation9 + $0x814] ss:$12 sps:$4 sm:$0xff]  }
 0x28a   :  { %5602 = vmatpush3.bf16.msra.mxu1 %v6449_v60 }
 0x28b   :  { %5603 = vmatprep.subr.bf16.mxu1 %v6453_v3  ;;  %v6488_v3 = vld [vmem:[#allocation9 + $0x810] ss:$12 sps:$4 sm:$0xff]  }
 0x28c   :  { %4561 = vmatpush1.bf16.msra.mxu0 %v6418_v27 }
 0x28d   :  { %4562 = vmatprep.subr.bf16.mxu0 %v6423_v28  ;;  %v6493_v28 = vld [vmem:[#allocation9 + $0x82c] ss:$12 sps:$4 sm:$0xff]  }
 0x28e   :  { %5604 = vmatpush3.bf16.msra.mxu1 %v6454_v29 }
 0x28f   :  { %5605 = vmatprep.subr.bf16.mxu1 %v6458_v13 }
 0x290   :  { %4563 = vmatpush1.bf16.msra.mxu0 %v6421_v30 }
 0x291   :  { %4564 = vmatprep.subr.bf16.mxu0 %v6426_v31 }
 0x292   :  { %5606 = vmatpush3.bf16.msra.mxu1 %v6459_v32  ;;  %v6491_v32 = vld [vmem:[#allocation9 + $0x828] ss:$12 sps:$4 sm:$0xff]  }
 0x293   :  { %5607 = vmatprep.subr.bf16.mxu1 %v6463_v33  ;;  %v6496_v33 = vld [vmem:[#allocation9 + $0x844] ss:$12 sps:$4 sm:$0xff]  }
 0x294   :  { %4565 = vmatpush1.bf16.msra.mxu0 %v6424_v35  ;;  %v6494_v35 = vld [vmem:[#allocation9 + $0x840] ss:$12 sps:$4 sm:$0xff]  }
 0x295   :  { %4566 = vmatprep.subr.bf16.mxu0 %v6429_v36  ;;  %v6499_v36 = vld [vmem:[#allocation9 + $0x85c] ss:$12 sps:$4 sm:$0xff]  }
 0x296   :  { %5608 = vmatpush3.bf16.msra.mxu1 %v6464_v37  ;;  %v6497_v37 = vld [vmem:[#allocation9 + $0x858] ss:$12 sps:$4 sm:$0xff]  }
 0x297   :  { %5609 = vmatprep.subr.bf16.mxu1 %v6468_v38  ;;  %v6502_v38 = vld [vmem:[#allocation9 + $0x874] ss:$12 sps:$4 sm:$0xff]  }
 0x298   :  { %4567 = vmatpush1.bf16.msra.mxu0 %v6427_v39  ;;  %v6500_v39 = vld [vmem:[#allocation9 + $0x870] ss:$12 sps:$4 sm:$0xff]  }
 0x299   :  { %4568 = vmatprep.subr.bf16.mxu0 %v6432_v40  ;;  %v6505_v40 = vld [vmem:[#allocation9 + $0x88c] ss:$12 sps:$4 sm:$0xff]  }
 0x29a   :  { %5610 = vmatpush3.bf16.msra.mxu1 %v6469_v41  ;;  %v6503_v41 = vld [vmem:[#allocation9 + $0x888] ss:$12 sps:$4 sm:$0xff]  }
 0x29c   :  { %4569 = vmatpush1.bf16.msra.mxu0 %v6430_v42  ;;  %v6508_v42 = vld [vmem:[#allocation9 + $0x8a4] ss:$12 sps:$4 sm:$0xff]  }
 0x29d   :  { %4570 = vmatprep.subr.bf16.mxu0 %v6437_v43  ;;  %v6506_v43 = vld [vmem:[#allocation9 + $0x8a0] ss:$12 sps:$4 sm:$0xff]  }
 0x2a0   :  { %4571 = vmatpush1.bf16.msra.mxu0 %v6435_v44  ;;  %v6511_v44 = vld [vmem:[#allocation9 + $0x8bc] ss:$12 sps:$4 sm:$0xff]  }
 0x2a1   :  { %4572 = vmatprep.subr.bf16.mxu0 %v6442_v45  ;;  %v2827_v45 = vld [vmem:[#allocation11] sm:$0x7] }
 0x2a4   :  { %4573 = vmatpush1.bf16.msra.mxu0 %v6440_v46  ;;  %v6509_v46 = vld [vmem:[#allocation9 + $0x8b8] ss:$12 sps:$4 sm:$0xff]  }
 0x2a5   :  { %4574 = vmatprep.subr.bf16.mxu0 %v6447_v47  ;;  %v6514_v47 = vld [vmem:[#allocation9 + $0x8d4] ss:$12 sps:$4 sm:$0xff]  }
 0x2a8   :  { %4575 = vmatpush1.bf16.msra.mxu0 %v6445_v48  ;;  %v2840_v48 = vrot.slane %v2827_v45, %v6830_v51 }
 0x2a9   :  { %4576 = vmatprep.subr.bf16.mxu0 %v6452_v50 }
 0x2ac   :  { %4577 = vmatpush1.bf16.msra.mxu0 %v6450_v54  ;;  %v6512_v54 = vld [vmem:[#allocation9 + $0x8d0] ss:$12 sps:$4 sm:$0xff]  }
 0x2ad   :  { %4578 = vmatprep.subr.bf16.mxu0 %v6457_v14 }
 0x2b0   :  { %4579 = vmatpush1.bf16.msra.mxu0 %v6455_v55  ;;  %v2398_v63 = vpop.f32.mrb[12].mxu1  ;;  %v6517_v55 = vld [vmem:[#allocation9 + $0x8ec] ss:$12 sps:$4 sm:$0xff]  }
 0x2b1   :  { %v5637_v1 = vadd.f32 %v2398_v63, %v434_v58  ;;  %v2400_v2 = vpop.f32.mrb[13].mxu1  ;;  %4580 = vmatprep.subr.bf16.mxu0 %v6462_v62 }
 0x2b2   :  { %v5638_v5 = vadd.f32 %v2400_v2, %v438_v57  ;;  %v2402_v6 = vpop.f32.mrb[14].mxu1 }
 0x2b3   :  { %v2417_v7 = vmax.f32 %v5637_v1, 0.0  ;;  %v5639_v8 = vadd.f32 %v2402_v6, %v434_v58  ;;  %v2404_v9 = vpop.f32.mrb[15].mxu1 }
 0x2b4   :  { %v2418_v10 = vmax.f32 %v5638_v5, 0.0  ;;  %v5640_v11 = vadd.f32 %v2404_v9, %v438_v57  ;;  %4581 = vmatpush1.bf16.msra.mxu0 %v6460_v0 }
 0x2b5   :  { %v2429_v52 = vmax.f32 %v5639_v8, 0.0  ;;  %4582 = vmatprep.subr.bf16.mxu0 %v6467_v4  ;;  %v6515_v4 = vld [vmem:[#allocation9 + $0x8e8] ss:$12 sps:$4 sm:$0xff]  }
 0x2b6   :  { %v2430_v34 = vmax.f32 %v5640_v11, 0.0 }
 0x2b7   :  { %v6871_v26 = vpack.c.bf16 %v2429_v52, %v2417_v7 }
 0x2b8   :  { %v2442_v16 = vpack.c.bf16 %v2430_v34, %v2418_v10  ;;  %4583 = vmatpush1.bf16.msra.mxu0 %v6465_v12 }
 0x2b9   :  { %4595 = vmatprep.subr.bf16.mxu0 %v6472_v49 }
 0x2ba   :  { %4875 = vmatprep.mubr.bf16.mxu1 %v2442_v16 }
 0x2bb   :  { %4585 = vmatmul.mubr.bf16.vlgmr.msra.gmra.mrb[8].mxu0 %v6849_v56  ;;  %4876 = vmatmul.mubr.bf16.vlgmr.msra.gmra.mrb[36].mxu1 %v6871_v26  ;;  %v6485_v56 = vld [vmem:[#allocation9 + $0x7f8] ss:$12 sps:$4 sm:$0xff]  }
 0x2bc   :  { %4596 = vmatpush1.bf16.msra.mxu0 %v6470_v17  ;;  %4627 = vmatprep.mubr.bf16.mxu0 %v2442_v16 }
 0x2bd   :  { %4597 = vmatprep.subr.bf16.mxu0 %v6475_v18 }
 0x2c0   :  { %4598 = vmatpush1.bf16.msra.mxu0 %v6473_v19 }
 0x2c1   :  { %4599 = vmatprep.subr.bf16.mxu0 %v6478_v21 }
 0x2c4   :  { %4600 = vmatpush1.bf16.msra.mxu0 %v6476_v22 }
 0x2c5   :  { %4601 = vmatprep.subr.bf16.mxu0 %v6481_v23 }
 0x2c8   :  { %4602 = vmatpush1.bf16.msra.mxu0 %v6479_v24 }
 0x2c9   :  { %4603 = vmatprep.subr.bf16.mxu0 %v6484_v15 }
 0x2cc   :  { %4604 = vmatpush1.bf16.msra.mxu0 %v6482_v61 }
 0x2cd   :  { %4605 = vmatprep.subr.bf16.mxu0 %v6487_v25 }
 0x2d0   :  { %4606 = vmatpush1.bf16.msra.mxu0 %v6485_v56  ;;  %v5501_v60 = vpop.f32.mrb[16].mxu1 }
 0x2d1   :  { %v5502_v27 = vpop.f32.mrb[17].mxu1  ;;  %4607 = vmatprep.subr.bf16.mxu0 %v6490_v59 }
 0x2d2   :  { %v5503_v29 = vadd.f32 %v5502_v27, %v5501_v60  ;;  %v5504_v13 = vpop.f32.mrb[18].mxu1 }
 0x2d3   :  { %v5505_v30 = vpop.f32.mrb[19].mxu1 }
 0x2d4   :  { %4608 = vmatpush1.bf16.msra.mxu0 %v6488_v3  ;;  %v5506_v31 = vadd.f32 %v5505_v30, %v5504_v13  ;;  %v4673_v58 = vadd.f32 %v5503_v29, %v2840_v48 }
 0x2d5   :  { %4609 = vmatprep.subr.bf16.mxu0 %v6493_v28 }
 0x2d6   :  { %v4676_v0 = vadd.f32 %v5506_v31, %v2840_v48  ;;  %v2832_v31 = vrot.slane %v2827_v45, %v6802_v53 }
 0x2d8   :  { %4610 = vmatpush1.bf16.msra.mxu0 %v6491_v32  ;;  %v2836_v32 = vrot.slane %v2827_v45, %v6805_v20 }
 0x2d9   :  { %4611 = vmatprep.subr.bf16.mxu0 %v6496_v33 }
 0x2dc   :  { %4612 = vmatpush1.bf16.msra.mxu0 %v6494_v35 }
 0x2dd   :  { %4613 = vmatprep.subr.bf16.mxu0 %v6499_v36 }
 0x2e0   :  { %4614 = vmatpush1.bf16.msra.mxu0 %v6497_v37 }
 0x2e1   :  { %4615 = vmatprep.subr.bf16.mxu0 %v6502_v38 }
 0x2e4   :  { %4616 = vmatpush1.bf16.msra.mxu0 %v6500_v39 }
 0x2e5   :  { %4617 = vmatprep.subr.bf16.mxu0 %v6505_v40 }
 0x2e8   :  { %4618 = vmatpush1.bf16.msra.mxu0 %v6503_v41 }
 0x2e9   :  { %4619 = vmatprep.subr.bf16.mxu0 %v6508_v42 }
 0x2ec   :  { %4620 = vmatpush1.bf16.msra.mxu0 %v6506_v43 }
 0x2ed   :  { %4621 = vmatprep.subr.bf16.mxu0 %v6511_v44 }
 0x2f0   :  { %4622 = vmatpush1.bf16.msra.mxu0 %v6509_v46  ;;  %v5523_v50 = vpop.f32.mrb[20].mxu1 }
 0x2f1   :  { %v5524_v14 = vpop.f32.mrb[21].mxu1  ;;  %4623 = vmatprep.subr.bf16.mxu0 %v6514_v47 }
 0x2f2   :  { %v5525_v62 = vadd.f32 %v5524_v14, %v5523_v50  ;;  %v5526_v57 = vpop.f32.mrb[22].mxu1 }
 0x2f3   :  { %v5527_v63 = vpop.f32.mrb[23].mxu1 }
 0x2f4   :  { %v4714_v1 = vadd.f32 %v5525_v62, %v4673_v58  ;;  %4624 = vmatpush1.bf16.msra.mxu0 %v6512_v54  ;;  %v5528_v2 = vadd.f32 %v5527_v63, %v5526_v57 }
 0x2f5   :  { %4625 = vmatprep.subr.bf16.mxu0 %v6517_v55 }
 0x2f6   :  { %v4717_v5 = vadd.f32 %v5528_v2, %v4676_v0 }
 0x2f8   :  { %4626 = vmatpush1.bf16.msra.mxu0 %v6515_v4 }
 0x2fb   :  { %4628 = vmatmul.mubr.bf16.vlgmr.msra.gmra.mrb[8].mxu0 %v6871_v26 }
 0x310   :  { %v5545_v51 = vpop.f32.mrb[24].mxu1 }
 0x311   :  { %v5546_v6 = vpop.f32.mrb[25].mxu1 }
 0x312   :  { %v5547_v7 = vadd.f32 %v5546_v6, %v5545_v51  ;;  %v5548_v8 = vpop.f32.mrb[26].mxu1 }
 0x313   :  { %v5549_v9 = vpop.f32.mrb[27].mxu1 }
 0x314   :  { %v4755_v10 = vadd.f32 %v5547_v7, %v4714_v1  ;;  %v5550_v11 = vadd.f32 %v5549_v9, %v5548_v8 }
 0x316   :  { %v4758_v12 = vadd.f32 %v5550_v11, %v4717_v5 }
 0x330   :  { %v5567_v52 = vpop.f32.mrb[28].mxu1 }
 0x331   :  { %v5568_v49 = vpop.f32.mrb[29].mxu1 }
 0x332   :  { %v5569_v34 = vadd.f32 %v5568_v49, %v5567_v52  ;;  %v5570_v16 = vpop.f32.mrb[30].mxu1 }
 0x333   :  { %v5571_v17 = vpop.f32.mrb[31].mxu1 }
 0x334   :  { %v4796_v18 = vadd.f32 %v5569_v34, %v4755_v10  ;;  %v5572_v19 = vadd.f32 %v5571_v17, %v5570_v16 }
 0x336   :  { %v4799_v21 = vadd.f32 %v5572_v19, %v4758_v12 }
 0x350   :  { %v5589_v22 = vpop.f32.mrb[32].mxu1 }
 0x351   :  { %v5590_v23 = vpop.f32.mrb[33].mxu1 }
 0x352   :  { %v5591_v24 = vadd.f32 %v5590_v23, %v5589_v22  ;;  %v5592_v26 = vpop.f32.mrb[34].mxu1 }
 0x353   :  { %v5593_v15 = vpop.f32.mrb[35].mxu1 }
 0x354   :  { %v4837_v61 = vadd.f32 %v5591_v24, %v4796_v18  ;;  %v5594_v25 = vadd.f32 %v5593_v15, %v5592_v26 }
 0x356   :  { %v4840_v56 = vadd.f32 %v5594_v25, %v4799_v21 }
 0x38e   :  { %v5611_v59 = vpop.f32.mrb[36].mxu1 }
 0x38f   :  { %v5612_v60 = vpop.f32.mrb[37].mxu1 }
 0x390   :  { %v5613_v3 = vadd.f32 %v5612_v60, %v5611_v59  ;;  %v5614_v27 = vpop.f32.mrb[38].mxu1 }
 0x391   :  { %v5615_v28 = vpop.f32.mrb[39].mxu1 }
 0x392   :  { %v4878_v29 = vadd.f32 %v5613_v3, %v4837_v61  ;;  %v5616_v13 = vadd.f32 %v5615_v28, %v5614_v27 }
 0x394   :  { %4886 = vst [vmem:[#allocation12 + $0x10] sm:$0xff] %v4878_v29  ;;  %v4881_v30 = vadd.f32 %v5616_v13, %v4840_v56 }
 0x396   :  { %4889 = vst [vmem:[#allocation12 + $0x28] sm:$0xff] %v4881_v30 }
 0x3ce   :  { %v4629_v33 = vpop.f32.mrb[8].mxu0 }
 0x3cf   :  { %v5641_v35 = vadd.f32 %v4629_v33, %v2832_v31  ;;  %v4631_v36 = vpop.f32.mrb[9].mxu0 }
 0x3d0   :  { %v5642_v37 = vadd.f32 %v4631_v36, %v2836_v32  ;;  %v4633_v38 = vpop.f32.mrb[10].mxu0 }
 0x3d1   :  { %4884 = vst [vmem:[#allocation12] sm:$0xff] %v5641_v35  ;;  %v5643_v39 = vadd.f32 %v4633_v38, %v2832_v31  ;;  %v4635_v40 = vpop.f32.mrb[11].mxu0 }
 0x3d2   :  { %4885 = vst [vmem:[#allocation12 + $0x8] sm:$0xff] %v5642_v37  ;;  %v5644_v41 = vadd.f32 %v4635_v40, %v2836_v32 }
 0x3d3   :  { %4887 = vst [vmem:[#allocation12 + $0x18] sm:$0xff] %v5643_v39 }
 0x3d4   :  { %4888 = vst [vmem:[#allocation12 + $0x20] sm:$0xff] %v5644_v41 }
 0x3d5   :  { %6640 = shalt.err (!%p6637_p2)
}
 0x3d6   :  { %s6641_s13 = scalar_lea.hbm %s6900_s6, 768 }
 0x3d7   :  { %p6642_p3 = scmp.ne.s32.totalorder %s6900_s6, %s6641_s13  ;;  %p6645_p4 = scmp.lt.u32.totalorder %s6641_s13, %s6900_s6 }
 0x3d9   :  { %p6647_p5 = pnand %p6645_p4, %p6642_p3 }
 0x3db   :  { %6650 = shalt.err (!%p6647_p5)
}
 0x3dc   :  { %4901 = dma.vmem_to_hbm [thread:$0]  %s4896_s9, 768, %s6900_s6, [#allocation5], %s6666_s4, %s6666_s4, %s6667_s8  }
 0x3dd   :  { %6657 = dma.done.wait [#allocation5], 768  }
 0x3de   :  { %6658 = vsyncadd [#allocation5], 4294966528 }
 0x3df   :  { %4905 = vsyncpa [#allocation4], 1 }
 0x3e0   :  { %4906 = vsyncpa [#allocation7], 1 }
 0x3e1   :  { %4907 = vsyncpa [#allocation10], 1 }
 0x3e2   :  { %4908 = vsyncpa [#allocation5], 1 }

</bundles_post_ra>
